<compile_context>
chip_gen: v6e
topology: v6e:2x2x1
jax: 0.10.0
libtpu: 0.0.40
codegen_flags: <defaults>
</compile_context>

<pallas_src>
import functools

import jax
import jax.numpy as jnp
from jax.experimental import pallas as pl
from jax.experimental.pallas import tpu as pltpu

O_PAD = 128  # lane-dense padded width of the FC (Linear+Sigmoid) output


def _sig(x):
    # sigmoid(x) == 0.5*tanh(0.5*x) + 0.5 : one EUP pass instead of exp+recip,
    # a pure latency win on the serial recurrence.
    return 0.5 * jnp.tanh(0.5 * x) + 0.5


def make_ann_kernel(num_layers, T, B, H):
    """Build the fused forward kernel for a fixed (static) configuration."""

    def kernel(*refs):
        # refs:
        #   x_ref                                   (T*B, Din)  bf16
        #   layer 0 : wih0 (Din,4H) bf16, whh0 (H,4H) bf16, b0 (1,4H) f32
        #   layer l>0: wcat_l (2H,4H) bf16 (= [Wih^T ; Whh^T]), b_l (1,4H) f32
        #   fc_w (H, O_PAD) bf16, fc_b (1, O_PAD) f32
        #   out_ref (T*B, O_PAD) f32
        x_ref = refs[0]
        wih0_ref, whh0_ref, b0_ref = refs[1], refs[2], refs[3]
        rest = refs[4:]
        upper_refs = []
        idx = 0
        for _ in range(num_layers - 1):
            upper_refs.append((rest[idx], rest[idx + 1]))
            idx += 2
        fcw_ref = rest[idx]
        fcb_ref = rest[idx + 1]
        out_ref = rest[idx + 2]

        def cell(pre, c_prev):
            # PyTorch gate order i, f, g, o; static lane slices of the fused
            # (B, 4H) pre-activation (all math in f32).
            i_g = _sig(pre[:, 0:H])
            g_g = jnp.tanh(pre[:, 2 * H:3 * H])
            o_g = _sig(pre[:, 3 * H:4 * H])
            ig = i_g * g_g
            if c_prev is None:            # t == 0: c_prev == 0, skip f*c term
                c = ig
            else:
                c = _sig(pre[:, H:2 * H]) * c_prev + ig
            h = o_g * jnp.tanh(c)
            return h, c

        # ---- layer 0: input projection hoisted over the whole sequence ------
        # One (T*B, Din) x (Din, 4H) MXU matmul, bias fused; stays in vregs.
        ihf0 = jnp.dot(x_ref[...], wih0_ref[...],
                       preferred_element_type=jnp.float32) + b0_ref[...]
        whh0 = whh0_ref[...]              # (H, 4H) fused-gate recurrent weights

        h_seq = [None] * T
        h, c = None, None
        for t in range(T):                # serial recurrence, fully unrolled
            pre = ihf0[t * B:(t + 1) * B, :]
            if t > 0:
                # single lane-dense (B,H)x(H,4H) matmul; RHS is loop-invariant
                pre = pre + jnp.dot(h.astype(jnp.bfloat16), whh0,
                                    preferred_element_type=jnp.float32)
            h, c = cell(pre, c)
            h_seq[t] = h

        # ---- layers 1..L-1: per-step fused [x_t ; h_{t-1}] @ [Wih ; Whh] -----
        # Per-step projection (instead of a full-sequence barrier) exposes the
        # layer wavefront to the scheduler.
        for wcat_ref, b_ref in upper_refs:
            wcat = wcat_ref[...]          # (2H, 4H)
            w_in = wcat[0:H, :]           # Wih^T part, used only at t == 0
            bias = b_ref[...]
            prev_seq = h_seq
            h_seq = [None] * T
            h, c = None, None
            for t in range(T):
                x_t = prev_seq[t].astype(jnp.bfloat16)
                if t == 0:                # h_prev == 0 -> only the input term
                    pre = jnp.dot(x_t, w_in,
                                  preferred_element_type=jnp.float32) + bias
                else:
                    cat = jnp.concatenate([x_t, h.astype(jnp.bfloat16)], axis=1)
                    pre = jnp.dot(cat, wcat,
                                  preferred_element_type=jnp.float32) + bias
                h, c = cell(pre, c)
                h_seq[t] = h

        # ---- fused final Linear + Sigmoid over all timesteps -----------------
        # Hidden sequence assembled from vregs; single (T*B,H)x(H,128) matmul
        # and one unmasked lane-dense (T*B,128) store.
        hs = jnp.concatenate(h_seq, axis=0).astype(jnp.bfloat16)
        y = jnp.dot(hs, fcw_ref[...],
                    preferred_element_type=jnp.float32) + fcb_ref[...]
        out_ref[...] = _sig(y)

    return kernel


def ann_forward(x, params, output_size):
    """x: (B, T, input_size), batch_first like nn.LSTM(batch_first=True)."""
    B, T, Din = x.shape
    num_layers = 1 + len(params["upper"])
    H = params["whh0"].shape[0]
    B_pad = max(8, ((B + 7) // 8) * 8)    # sublane minimum

    # Time-major, batch-padded, flattened to (T*B_pad, Din); row = t*B_pad + b.
    x_tm = jnp.transpose(x, (1, 0, 2)).astype(jnp.float32)
    x_tm = jnp.pad(x_tm, ((0, 0), (0, B_pad - B), (0, 0)))
    x_flat = x_tm.reshape(T * B_pad, Din).astype(jnp.bfloat16)

    inputs = [x_flat, params["wih0"], params["whh0"], params["b0"]]
    in_specs = [
        pl.BlockSpec(x_flat.shape, lambda: (0, 0)),
        pl.BlockSpec(params["wih0"].shape, lambda: (0, 0)),
        pl.BlockSpec(params["whh0"].shape, lambda: (0, 0)),
        pl.BlockSpec(params["b0"].shape, lambda: (0, 0)),
    ]
    for (wcat, b2d) in params["upper"]:
        inputs += [wcat, b2d]
        in_specs += [
            pl.BlockSpec(wcat.shape, lambda: (0, 0)),
            pl.BlockSpec(b2d.shape, lambda: (0, 0)),
        ]
    inputs += [params["fc_w_pad"], params["fc_b_pad"]]
    in_specs += [
        pl.BlockSpec(params["fc_w_pad"].shape, lambda: (0, 0)),
        pl.BlockSpec(params["fc_b_pad"].shape, lambda: (0, 0)),
    ]

    kernel = make_ann_kernel(num_layers, T, B_pad, H)
    out_flat = pl.pallas_call(
        kernel,
        out_shape=jax.ShapeDtypeStruct((T * B_pad, O_PAD), jnp.float32),
        grid=(),
        in_specs=in_specs,
        out_specs=pl.BlockSpec((T * B_pad, O_PAD), lambda: (0, 0)),
        compiler_params=pltpu.CompilerParams(
            vmem_limit_bytes=32 * 1024 * 1024),
    )(*inputs)

    out = out_flat.reshape(T, B_pad, O_PAD)[:, :B, :output_size]
    return jnp.transpose(out, (1, 0, 2))  # back to (B, T, O), batch_first


def init_params(key, input_size, hidden_size, output_size, num_layers):
    """Deterministic synthetic parameters in PyTorch nn.LSTM / nn.Linear
    layouts (raw, f32) plus the kernel's pre-transformed layouts."""
    H = hidden_size
    bound = 1.0 / float(hidden_size) ** 0.5
    raw = {"lstm": []}
    kern = {"upper": []}
    for layer in range(num_layers):
        din = input_size if layer == 0 else hidden_size
        key, k1, k2, k3, k4 = jax.random.split(key, 5)
        w_ih = jax.random.uniform(k1, (4 * H, din), jnp.float32, -bound, bound)
        w_hh = jax.random.uniform(k2, (4 * H, H), jnp.float32, -bound, bound)
        b_ih = jax.random.uniform(k3, (4 * H,), jnp.float32, -bound, bound)
        b_hh = jax.random.uniform(k4, (4 * H,), jnp.float32, -bound, bound)
        raw["lstm"].append((w_ih, w_hh, b_ih, b_hh))
        b2d = (b_ih + b_hh).reshape(1, 4 * H)                 # fused bias, f32
        if layer == 0:
            kern["wih0"] = w_ih.T.astype(jnp.bfloat16)        # (Din, 4H)
            kern["whh0"] = w_hh.T.astype(jnp.bfloat16)        # (H, 4H) fused gates
            kern["b0"] = b2d
        else:
            # Fused [Wih^T ; Whh^T] so the per-step projection + recurrence is
            # a single (B,2H)x(2H,4H) matmul.
            wcat = jnp.concatenate([w_ih.T, w_hh.T], axis=0)  # (2H, 4H)
            kern["upper"].append((wcat.astype(jnp.bfloat16), b2d))
    key, kw, kb = jax.random.split(key, 3)
    fc_w = jax.random.uniform(kw, (output_size, H), jnp.float32, -bound, bound)
    fc_b = jax.random.normal(kb, (output_size,), jnp.float32)  # nn.init.normal_
    raw["fc_w"], raw["fc_b"] = fc_w, fc_b
    fc_w_pad = jnp.zeros((H, O_PAD), jnp.float32).at[:, :output_size].set(fc_w.T)
    fc_b_pad = jnp.zeros((1, O_PAD), jnp.float32).at[0, :output_size].set(fc_b)
    kern["fc_w_pad"] = fc_w_pad.astype(jnp.bfloat16)
    kern["fc_b_pad"] = fc_b_pad
    return raw, kern


def ann_reference(x, raw):
    """Pure-JAX f32 reference matching the PyTorch module semantics."""
    B, T, _ = x.shape
    h_in = x
    for (w_ih, w_hh, b_ih, b_hh) in raw["lstm"]:
        H = w_hh.shape[1]
        h = jnp.zeros((B, H), jnp.float32)
        c = jnp.zeros((B, H), jnp.float32)
        outs = []
        for t in range(T):
            g = h_in[:, t, :] @ w_ih.T + b_ih + h @ w_hh.T + b_hh
            i_g = jax.nn.sigmoid(g[:, 0:H])
            f_g = jax.nn.sigmoid(g[:, H:2 * H])
            g_g = jnp.tanh(g[:, 2 * H:3 * H])
            o_g = jax.nn.sigmoid(g[:, 3 * H:4 * H])
            c = f_g * c + i_g * g_g
            h = o_g * jnp.tanh(c)
            outs.append(h)
        h_in = jnp.stack(outs, axis=1)
    return jax.nn.sigmoid(h_in @ raw["fc_w"].T + raw["fc_b"])


if __name__ == "__main__":
    input_size, hidden_size, output_size, num_lstm_layers = 8, 32, 4, 2
    batch, seq = 2, 8

    key = jax.random.PRNGKey(0)
    key, kx = jax.random.split(key)
    x = jax.random.normal(kx, (batch, seq, input_size), jnp.float32)

    raw_params, kernel_params = init_params(
        key, input_size, hidden_size, output_size, num_lstm_layers)

    forward = jax.jit(functools.partial(ann_forward, output_size=output_size))
    out = forward(x, kernel_params)
    out = jax.block_until_ready(out)

    ref = ann_reference(x, raw_params)

    assert out.shape == (batch, seq, output_size)
    assert bool(jnp.all(jnp.isfinite(out)))
    assert bool(jnp.all((out >= 0.0) & (out <= 1.0)))            # sigmoid range
    # bf16 matmul operands (f32 accumulate / element-wise) -> loose tolerance.
    assert bool(jnp.allclose(out, ref, atol=5e-2)), "mismatch vs f32 reference"
    print("KERNEL_OK")
</pallas_src>

<mosaic_0001>
module attributes {stable_mosaic.version = 11 : i64} {
  func.func @kernel(%arg0: memref<64x8xbf16, #tpu.memory_space<vmem>>, %arg1: memref<8x128xbf16, #tpu.memory_space<vmem>>, %arg2: memref<32x128xbf16, #tpu.memory_space<vmem>>, %arg3: memref<1x128xf32, #tpu.memory_space<vmem>>, %arg4: memref<64x128xbf16, #tpu.memory_space<vmem>>, %arg5: memref<1x128xf32, #tpu.memory_space<vmem>>, %arg6: memref<32x128xbf16, #tpu.memory_space<vmem>>, %arg7: memref<1x128xf32, #tpu.memory_space<vmem>>, %arg8: memref<64x128xf32, #tpu.memory_space<vmem>>) attributes {dimension_semantics = [], scalar_prefetch = 0 : i64, scratch_operands = 0 : i64, tpu.core_type = #tpu.core_type<tc>} {
    %c0 = arith.constant 0 : index
    %c0_0 = arith.constant 0 : index
    %0 = vector.load %arg0[%c0, %c0_0] : memref<64x8xbf16, #tpu.memory_space<vmem>>, vector<64x8xbf16>
    %c0_1 = arith.constant 0 : index
    %c0_2 = arith.constant 0 : index
    %1 = vector.load %arg1[%c0_1, %c0_2] : memref<8x128xbf16, #tpu.memory_space<vmem>>, vector<8x128xbf16>
    %cst = arith.constant dense<0.000000e+00> : vector<64x128xf32>
    %2 = tpu.matmul %0, %1, %cst {dimension_numbers = #tpu.dot_dimension_numbers<[1], [0], [0], [1], [0, 0, 1, 1], [], []>} : vector<64x8xbf16>, vector<8x128xbf16>, vector<64x128xf32> -> vector<64x128xf32>
    %c0_3 = arith.constant 0 : index
    %c0_4 = arith.constant 0 : index
    %3 = vector.load %arg3[%c0_3, %c0_4] : memref<1x128xf32, #tpu.memory_space<vmem>>, vector<1x128xf32>
    %4 = vector.broadcast %3 : vector<1x128xf32> to vector<64x128xf32>
    %5 = arith.addf %2, %4 : vector<64x128xf32>
    %c0_5 = arith.constant 0 : index
    %c0_6 = arith.constant 0 : index
    %6 = vector.load %arg2[%c0_5, %c0_6] : memref<32x128xbf16, #tpu.memory_space<vmem>>, vector<32x128xbf16>
    %7 = vector.extract_strided_slice %5 {offsets = [0, 0], sizes = [8, 128], strides = [1, 1]} : vector<64x128xf32> to vector<8x128xf32>
    %8 = vector.extract_strided_slice %7 {offsets = [0, 0], sizes = [8, 32], strides = [1, 1]} : vector<8x128xf32> to vector<8x32xf32>
    %cst_7 = arith.constant 5.000000e-01 : f32
    %9 = vector.broadcast %cst_7 : f32 to vector<8x32xf32>
    %10 = arith.mulf %9, %8 : vector<8x32xf32>
    %11 = math.tanh %10 : vector<8x32xf32>
    %cst_8 = arith.constant 5.000000e-01 : f32
    %12 = vector.broadcast %cst_8 : f32 to vector<8x32xf32>
    %13 = arith.mulf %12, %11 : vector<8x32xf32>
    %cst_9 = arith.constant 5.000000e-01 : f32
    %14 = vector.broadcast %cst_9 : f32 to vector<8x32xf32>
    %15 = arith.addf %13, %14 : vector<8x32xf32>
    %16 = vector.extract_strided_slice %7 {offsets = [0, 64], sizes = [8, 32], strides = [1, 1]} : vector<8x128xf32> to vector<8x32xf32>
    %17 = math.tanh %16 : vector<8x32xf32>
    %18 = vector.extract_strided_slice %7 {offsets = [0, 96], sizes = [8, 32], strides = [1, 1]} : vector<8x128xf32> to vector<8x32xf32>
    %cst_10 = arith.constant 5.000000e-01 : f32
    %19 = vector.broadcast %cst_10 : f32 to vector<8x32xf32>
    %20 = arith.mulf %19, %18 : vector<8x32xf32>
    %21 = math.tanh %20 : vector<8x32xf32>
    %cst_11 = arith.constant 5.000000e-01 : f32
    %22 = vector.broadcast %cst_11 : f32 to vector<8x32xf32>
    %23 = arith.mulf %22, %21 : vector<8x32xf32>
    %cst_12 = arith.constant 5.000000e-01 : f32
    %24 = vector.broadcast %cst_12 : f32 to vector<8x32xf32>
    %25 = arith.addf %23, %24 : vector<8x32xf32>
    %26 = arith.mulf %15, %17 : vector<8x32xf32>
    %27 = math.tanh %26 : vector<8x32xf32>
    %28 = arith.mulf %25, %27 : vector<8x32xf32>
    %29 = vector.extract_strided_slice %5 {offsets = [8, 0], sizes = [8, 128], strides = [1, 1]} : vector<64x128xf32> to vector<8x128xf32>
    %30 = arith.truncf %28 : vector<8x32xf32> to vector<8x32xbf16>
    %cst_13 = arith.constant dense<0.000000e+00> : vector<8x128xf32>
    %31 = tpu.matmul %30, %6, %cst_13 {dimension_numbers = #tpu.dot_dimension_numbers<[1], [0], [0], [1], [0, 0, 1, 1], [], []>} : vector<8x32xbf16>, vector<32x128xbf16>, vector<8x128xf32> -> vector<8x128xf32>
    %32 = arith.addf %29, %31 : vector<8x128xf32>
    %33 = vector.extract_strided_slice %32 {offsets = [0, 0], sizes = [8, 32], strides = [1, 1]} : vector<8x128xf32> to vector<8x32xf32>
    %cst_14 = arith.constant 5.000000e-01 : f32
    %34 = vector.broadcast %cst_14 : f32 to vector<8x32xf32>
    %35 = arith.mulf %34, %33 : vector<8x32xf32>
    %36 = math.tanh %35 : vector<8x32xf32>
    %cst_15 = arith.constant 5.000000e-01 : f32
    %37 = vector.broadcast %cst_15 : f32 to vector<8x32xf32>
    %38 = arith.mulf %37, %36 : vector<8x32xf32>
    %cst_16 = arith.constant 5.000000e-01 : f32
    %39 = vector.broadcast %cst_16 : f32 to vector<8x32xf32>
    %40 = arith.addf %38, %39 : vector<8x32xf32>
    %41 = vector.extract_strided_slice %32 {offsets = [0, 64], sizes = [8, 32], strides = [1, 1]} : vector<8x128xf32> to vector<8x32xf32>
    %42 = math.tanh %41 : vector<8x32xf32>
    %43 = vector.extract_strided_slice %32 {offsets = [0, 96], sizes = [8, 32], strides = [1, 1]} : vector<8x128xf32> to vector<8x32xf32>
    %cst_17 = arith.constant 5.000000e-01 : f32
    %44 = vector.broadcast %cst_17 : f32 to vector<8x32xf32>
    %45 = arith.mulf %44, %43 : vector<8x32xf32>
    %46 = math.tanh %45 : vector<8x32xf32>
    %cst_18 = arith.constant 5.000000e-01 : f32
    %47 = vector.broadcast %cst_18 : f32 to vector<8x32xf32>
    %48 = arith.mulf %47, %46 : vector<8x32xf32>
    %cst_19 = arith.constant 5.000000e-01 : f32
    %49 = vector.broadcast %cst_19 : f32 to vector<8x32xf32>
    %50 = arith.addf %48, %49 : vector<8x32xf32>
    %51 = arith.mulf %40, %42 : vector<8x32xf32>
    %52 = vector.extract_strided_slice %32 {offsets = [0, 32], sizes = [8, 32], strides = [1, 1]} : vector<8x128xf32> to vector<8x32xf32>
    %cst_20 = arith.constant 5.000000e-01 : f32
    %53 = vector.broadcast %cst_20 : f32 to vector<8x32xf32>
    %54 = arith.mulf %53, %52 : vector<8x32xf32>
    %55 = math.tanh %54 : vector<8x32xf32>
    %cst_21 = arith.constant 5.000000e-01 : f32
    %56 = vector.broadcast %cst_21 : f32 to vector<8x32xf32>
    %57 = arith.mulf %56, %55 : vector<8x32xf32>
    %cst_22 = arith.constant 5.000000e-01 : f32
    %58 = vector.broadcast %cst_22 : f32 to vector<8x32xf32>
    %59 = arith.addf %57, %58 : vector<8x32xf32>
    %60 = arith.mulf %59, %26 : vector<8x32xf32>
    %61 = arith.addf %60, %51 : vector<8x32xf32>
    %62 = math.tanh %61 : vector<8x32xf32>
    %63 = arith.mulf %50, %62 : vector<8x32xf32>
    %64 = vector.extract_strided_slice %5 {offsets = [16, 0], sizes = [8, 128], strides = [1, 1]} : vector<64x128xf32> to vector<8x128xf32>
    %65 = arith.truncf %63 : vector<8x32xf32> to vector<8x32xbf16>
    %cst_23 = arith.constant dense<0.000000e+00> : vector<8x128xf32>
    %66 = tpu.matmul %65, %6, %cst_23 {dimension_numbers = #tpu.dot_dimension_numbers<[1], [0], [0], [1], [0, 0, 1, 1], [], []>} : vector<8x32xbf16>, vector<32x128xbf16>, vector<8x128xf32> -> vector<8x128xf32>
    %67 = arith.addf %64, %66 : vector<8x128xf32>
    %68 = vector.extract_strided_slice %67 {offsets = [0, 0], sizes = [8, 32], strides = [1, 1]} : vector<8x128xf32> to vector<8x32xf32>
    %cst_24 = arith.constant 5.000000e-01 : f32
    %69 = vector.broadcast %cst_24 : f32 to vector<8x32xf32>
    %70 = arith.mulf %69, %68 : vector<8x32xf32>
    %71 = math.tanh %70 : vector<8x32xf32>
    %cst_25 = arith.constant 5.000000e-01 : f32
    %72 = vector.broadcast %cst_25 : f32 to vector<8x32xf32>
    %73 = arith.mulf %72, %71 : vector<8x32xf32>
    %cst_26 = arith.constant 5.000000e-01 : f32
    %74 = vector.broadcast %cst_26 : f32 to vector<8x32xf32>
    %75 = arith.addf %73, %74 : vector<8x32xf32>
    %76 = vector.extract_strided_slice %67 {offsets = [0, 64], sizes = [8, 32], strides = [1, 1]} : vector<8x128xf32> to vector<8x32xf32>
    %77 = math.tanh %76 : vector<8x32xf32>
    %78 = vector.extract_strided_slice %67 {offsets = [0, 96], sizes = [8, 32], strides = [1, 1]} : vector<8x128xf32> to vector<8x32xf32>
    %cst_27 = arith.constant 5.000000e-01 : f32
    %79 = vector.broadcast %cst_27 : f32 to vector<8x32xf32>
    %80 = arith.mulf %79, %78 : vector<8x32xf32>
    %81 = math.tanh %80 : vector<8x32xf32>
    %cst_28 = arith.constant 5.000000e-01 : f32
    %82 = vector.broadcast %cst_28 : f32 to vector<8x32xf32>
    %83 = arith.mulf %82, %81 : vector<8x32xf32>
    %cst_29 = arith.constant 5.000000e-01 : f32
    %84 = vector.broadcast %cst_29 : f32 to vector<8x32xf32>
    %85 = arith.addf %83, %84 : vector<8x32xf32>
    %86 = arith.mulf %75, %77 : vector<8x32xf32>
    %87 = vector.extract_strided_slice %67 {offsets = [0, 32], sizes = [8, 32], strides = [1, 1]} : vector<8x128xf32> to vector<8x32xf32>
    %cst_30 = arith.constant 5.000000e-01 : f32
    %88 = vector.broadcast %cst_30 : f32 to vector<8x32xf32>
    %89 = arith.mulf %88, %87 : vector<8x32xf32>
    %90 = math.tanh %89 : vector<8x32xf32>
    %cst_31 = arith.constant 5.000000e-01 : f32
    %91 = vector.broadcast %cst_31 : f32 to vector<8x32xf32>
    %92 = arith.mulf %91, %90 : vector<8x32xf32>
    %cst_32 = arith.constant 5.000000e-01 : f32
    %93 = vector.broadcast %cst_32 : f32 to vector<8x32xf32>
    %94 = arith.addf %92, %93 : vector<8x32xf32>
    %95 = arith.mulf %94, %61 : vector<8x32xf32>
    %96 = arith.addf %95, %86 : vector<8x32xf32>
    %97 = math.tanh %96 : vector<8x32xf32>
    %98 = arith.mulf %85, %97 : vector<8x32xf32>
    %99 = vector.extract_strided_slice %5 {offsets = [24, 0], sizes = [8, 128], strides = [1, 1]} : vector<64x128xf32> to vector<8x128xf32>
    %100 = arith.truncf %98 : vector<8x32xf32> to vector<8x32xbf16>
    %cst_33 = arith.constant dense<0.000000e+00> : vector<8x128xf32>
    %101 = tpu.matmul %100, %6, %cst_33 {dimension_numbers = #tpu.dot_dimension_numbers<[1], [0], [0], [1], [0, 0, 1, 1], [], []>} : vector<8x32xbf16>, vector<32x128xbf16>, vector<8x128xf32> -> vector<8x128xf32>
    %102 = arith.addf %99, %101 : vector<8x128xf32>
    %103 = vector.extract_strided_slice %102 {offsets = [0, 0], sizes = [8, 32], strides = [1, 1]} : vector<8x128xf32> to vector<8x32xf32>
    %cst_34 = arith.constant 5.000000e-01 : f32
    %104 = vector.broadcast %cst_34 : f32 to vector<8x32xf32>
    %105 = arith.mulf %104, %103 : vector<8x32xf32>
    %106 = math.tanh %105 : vector<8x32xf32>
    %cst_35 = arith.constant 5.000000e-01 : f32
    %107 = vector.broadcast %cst_35 : f32 to vector<8x32xf32>
    %108 = arith.mulf %107, %106 : vector<8x32xf32>
    %cst_36 = arith.constant 5.000000e-01 : f32
    %109 = vector.broadcast %cst_36 : f32 to vector<8x32xf32>
    %110 = arith.addf %108, %109 : vector<8x32xf32>
    %111 = vector.extract_strided_slice %102 {offsets = [0, 64], sizes = [8, 32], strides = [1, 1]} : vector<8x128xf32> to vector<8x32xf32>
    %112 = math.tanh %111 : vector<8x32xf32>
    %113 = vector.extract_strided_slice %102 {offsets = [0, 96], sizes = [8, 32], strides = [1, 1]} : vector<8x128xf32> to vector<8x32xf32>
    %cst_37 = arith.constant 5.000000e-01 : f32
    %114 = vector.broadcast %cst_37 : f32 to vector<8x32xf32>
    %115 = arith.mulf %114, %113 : vector<8x32xf32>
    %116 = math.tanh %115 : vector<8x32xf32>
    %cst_38 = arith.constant 5.000000e-01 : f32
    %117 = vector.broadcast %cst_38 : f32 to vector<8x32xf32>
    %118 = arith.mulf %117, %116 : vector<8x32xf32>
    %cst_39 = arith.constant 5.000000e-01 : f32
    %119 = vector.broadcast %cst_39 : f32 to vector<8x32xf32>
    %120 = arith.addf %118, %119 : vector<8x32xf32>
    %121 = arith.mulf %110, %112 : vector<8x32xf32>
    %122 = vector.extract_strided_slice %102 {offsets = [0, 32], sizes = [8, 32], strides = [1, 1]} : vector<8x128xf32> to vector<8x32xf32>
    %cst_40 = arith.constant 5.000000e-01 : f32
    %123 = vector.broadcast %cst_40 : f32 to vector<8x32xf32>
    %124 = arith.mulf %123, %122 : vector<8x32xf32>
    %125 = math.tanh %124 : vector<8x32xf32>
    %cst_41 = arith.constant 5.000000e-01 : f32
    %126 = vector.broadcast %cst_41 : f32 to vector<8x32xf32>
    %127 = arith.mulf %126, %125 : vector<8x32xf32>
    %cst_42 = arith.constant 5.000000e-01 : f32
    %128 = vector.broadcast %cst_42 : f32 to vector<8x32xf32>
    %129 = arith.addf %127, %128 : vector<8x32xf32>
    %130 = arith.mulf %129, %96 : vector<8x32xf32>
    %131 = arith.addf %130, %121 : vector<8x32xf32>
    %132 = math.tanh %131 : vector<8x32xf32>
    %133 = arith.mulf %120, %132 : vector<8x32xf32>
    %134 = vector.extract_strided_slice %5 {offsets = [32, 0], sizes = [8, 128], strides = [1, 1]} : vector<64x128xf32> to vector<8x128xf32>
    %135 = arith.truncf %133 : vector<8x32xf32> to vector<8x32xbf16>
    %cst_43 = arith.constant dense<0.000000e+00> : vector<8x128xf32>
    %136 = tpu.matmul %135, %6, %cst_43 {dimension_numbers = #tpu.dot_dimension_numbers<[1], [0], [0], [1], [0, 0, 1, 1], [], []>} : vector<8x32xbf16>, vector<32x128xbf16>, vector<8x128xf32> -> vector<8x128xf32>
    %137 = arith.addf %134, %136 : vector<8x128xf32>
    %138 = vector.extract_strided_slice %137 {offsets = [0, 0], sizes = [8, 32], strides = [1, 1]} : vector<8x128xf32> to vector<8x32xf32>
    %cst_44 = arith.constant 5.000000e-01 : f32
    %139 = vector.broadcast %cst_44 : f32 to vector<8x32xf32>
    %140 = arith.mulf %139, %138 : vector<8x32xf32>
    %141 = math.tanh %140 : vector<8x32xf32>
    %cst_45 = arith.constant 5.000000e-01 : f32
    %142 = vector.broadcast %cst_45 : f32 to vector<8x32xf32>
    %143 = arith.mulf %142, %141 : vector<8x32xf32>
    %cst_46 = arith.constant 5.000000e-01 : f32
    %144 = vector.broadcast %cst_46 : f32 to vector<8x32xf32>
    %145 = arith.addf %143, %144 : vector<8x32xf32>
    %146 = vector.extract_strided_slice %137 {offsets = [0, 64], sizes = [8, 32], strides = [1, 1]} : vector<8x128xf32> to vector<8x32xf32>
    %147 = math.tanh %146 : vector<8x32xf32>
    %148 = vector.extract_strided_slice %137 {offsets = [0, 96], sizes = [8, 32], strides = [1, 1]} : vector<8x128xf32> to vector<8x32xf32>
    %cst_47 = arith.constant 5.000000e-01 : f32
    %149 = vector.broadcast %cst_47 : f32 to vector<8x32xf32>
    %150 = arith.mulf %149, %148 : vector<8x32xf32>
    %151 = math.tanh %150 : vector<8x32xf32>
    %cst_48 = arith.constant 5.000000e-01 : f32
    %152 = vector.broadcast %cst_48 : f32 to vector<8x32xf32>
    %153 = arith.mulf %152, %151 : vector<8x32xf32>
    %cst_49 = arith.constant 5.000000e-01 : f32
    %154 = vector.broadcast %cst_49 : f32 to vector<8x32xf32>
    %155 = arith.addf %153, %154 : vector<8x32xf32>
    %156 = arith.mulf %145, %147 : vector<8x32xf32>
    %157 = vector.extract_strided_slice %137 {offsets = [0, 32], sizes = [8, 32], strides = [1, 1]} : vector<8x128xf32> to vector<8x32xf32>
    %cst_50 = arith.constant 5.000000e-01 : f32
    %158 = vector.broadcast %cst_50 : f32 to vector<8x32xf32>
    %159 = arith.mulf %158, %157 : vector<8x32xf32>
    %160 = math.tanh %159 : vector<8x32xf32>
    %cst_51 = arith.constant 5.000000e-01 : f32
    %161 = vector.broadcast %cst_51 : f32 to vector<8x32xf32>
    %162 = arith.mulf %161, %160 : vector<8x32xf32>
    %cst_52 = arith.constant 5.000000e-01 : f32
    %163 = vector.broadcast %cst_52 : f32 to vector<8x32xf32>
    %164 = arith.addf %162, %163 : vector<8x32xf32>
    %165 = arith.mulf %164, %131 : vector<8x32xf32>
    %166 = arith.addf %165, %156 : vector<8x32xf32>
    %167 = math.tanh %166 : vector<8x32xf32>
    %168 = arith.mulf %155, %167 : vector<8x32xf32>
    %169 = vector.extract_strided_slice %5 {offsets = [40, 0], sizes = [8, 128], strides = [1, 1]} : vector<64x128xf32> to vector<8x128xf32>
    %170 = arith.truncf %168 : vector<8x32xf32> to vector<8x32xbf16>
    %cst_53 = arith.constant dense<0.000000e+00> : vector<8x128xf32>
    %171 = tpu.matmul %170, %6, %cst_53 {dimension_numbers = #tpu.dot_dimension_numbers<[1], [0], [0], [1], [0, 0, 1, 1], [], []>} : vector<8x32xbf16>, vector<32x128xbf16>, vector<8x128xf32> -> vector<8x128xf32>
    %172 = arith.addf %169, %171 : vector<8x128xf32>
    %173 = vector.extract_strided_slice %172 {offsets = [0, 0], sizes = [8, 32], strides = [1, 1]} : vector<8x128xf32> to vector<8x32xf32>
    %cst_54 = arith.constant 5.000000e-01 : f32
    %174 = vector.broadcast %cst_54 : f32 to vector<8x32xf32>
    %175 = arith.mulf %174, %173 : vector<8x32xf32>
    %176 = math.tanh %175 : vector<8x32xf32>
    %cst_55 = arith.constant 5.000000e-01 : f32
    %177 = vector.broadcast %cst_55 : f32 to vector<8x32xf32>
    %178 = arith.mulf %177, %176 : vector<8x32xf32>
    %cst_56 = arith.constant 5.000000e-01 : f32
    %179 = vector.broadcast %cst_56 : f32 to vector<8x32xf32>
    %180 = arith.addf %178, %179 : vector<8x32xf32>
    %181 = vector.extract_strided_slice %172 {offsets = [0, 64], sizes = [8, 32], strides = [1, 1]} : vector<8x128xf32> to vector<8x32xf32>
    %182 = math.tanh %181 : vector<8x32xf32>
    %183 = vector.extract_strided_slice %172 {offsets = [0, 96], sizes = [8, 32], strides = [1, 1]} : vector<8x128xf32> to vector<8x32xf32>
    %cst_57 = arith.constant 5.000000e-01 : f32
    %184 = vector.broadcast %cst_57 : f32 to vector<8x32xf32>
    %185 = arith.mulf %184, %183 : vector<8x32xf32>
    %186 = math.tanh %185 : vector<8x32xf32>
    %cst_58 = arith.constant 5.000000e-01 : f32
    %187 = vector.broadcast %cst_58 : f32 to vector<8x32xf32>
    %188 = arith.mulf %187, %186 : vector<8x32xf32>
    %cst_59 = arith.constant 5.000000e-01 : f32
    %189 = vector.broadcast %cst_59 : f32 to vector<8x32xf32>
    %190 = arith.addf %188, %189 : vector<8x32xf32>
    %191 = arith.mulf %180, %182 : vector<8x32xf32>
    %192 = vector.extract_strided_slice %172 {offsets = [0, 32], sizes = [8, 32], strides = [1, 1]} : vector<8x128xf32> to vector<8x32xf32>
    %cst_60 = arith.constant 5.000000e-01 : f32
    %193 = vector.broadcast %cst_60 : f32 to vector<8x32xf32>
    %194 = arith.mulf %193, %192 : vector<8x32xf32>
    %195 = math.tanh %194 : vector<8x32xf32>
    %cst_61 = arith.constant 5.000000e-01 : f32
    %196 = vector.broadcast %cst_61 : f32 to vector<8x32xf32>
    %197 = arith.mulf %196, %195 : vector<8x32xf32>
    %cst_62 = arith.constant 5.000000e-01 : f32
    %198 = vector.broadcast %cst_62 : f32 to vector<8x32xf32>
    %199 = arith.addf %197, %198 : vector<8x32xf32>
    %200 = arith.mulf %199, %166 : vector<8x32xf32>
    %201 = arith.addf %200, %191 : vector<8x32xf32>
    %202 = math.tanh %201 : vector<8x32xf32>
    %203 = arith.mulf %190, %202 : vector<8x32xf32>
    %204 = vector.extract_strided_slice %5 {offsets = [48, 0], sizes = [8, 128], strides = [1, 1]} : vector<64x128xf32> to vector<8x128xf32>
    %205 = arith.truncf %203 : vector<8x32xf32> to vector<8x32xbf16>
    %cst_63 = arith.constant dense<0.000000e+00> : vector<8x128xf32>
    %206 = tpu.matmul %205, %6, %cst_63 {dimension_numbers = #tpu.dot_dimension_numbers<[1], [0], [0], [1], [0, 0, 1, 1], [], []>} : vector<8x32xbf16>, vector<32x128xbf16>, vector<8x128xf32> -> vector<8x128xf32>
    %207 = arith.addf %204, %206 : vector<8x128xf32>
    %208 = vector.extract_strided_slice %207 {offsets = [0, 0], sizes = [8, 32], strides = [1, 1]} : vector<8x128xf32> to vector<8x32xf32>
    %cst_64 = arith.constant 5.000000e-01 : f32
    %209 = vector.broadcast %cst_64 : f32 to vector<8x32xf32>
    %210 = arith.mulf %209, %208 : vector<8x32xf32>
    %211 = math.tanh %210 : vector<8x32xf32>
    %cst_65 = arith.constant 5.000000e-01 : f32
    %212 = vector.broadcast %cst_65 : f32 to vector<8x32xf32>
    %213 = arith.mulf %212, %211 : vector<8x32xf32>
    %cst_66 = arith.constant 5.000000e-01 : f32
    %214 = vector.broadcast %cst_66 : f32 to vector<8x32xf32>
    %215 = arith.addf %213, %214 : vector<8x32xf32>
    %216 = vector.extract_strided_slice %207 {offsets = [0, 64], sizes = [8, 32], strides = [1, 1]} : vector<8x128xf32> to vector<8x32xf32>
    %217 = math.tanh %216 : vector<8x32xf32>
    %218 = vector.extract_strided_slice %207 {offsets = [0, 96], sizes = [8, 32], strides = [1, 1]} : vector<8x128xf32> to vector<8x32xf32>
    %cst_67 = arith.constant 5.000000e-01 : f32
    %219 = vector.broadcast %cst_67 : f32 to vector<8x32xf32>
    %220 = arith.mulf %219, %218 : vector<8x32xf32>
    %221 = math.tanh %220 : vector<8x32xf32>
    %cst_68 = arith.constant 5.000000e-01 : f32
    %222 = vector.broadcast %cst_68 : f32 to vector<8x32xf32>
    %223 = arith.mulf %222, %221 : vector<8x32xf32>
    %cst_69 = arith.constant 5.000000e-01 : f32
    %224 = vector.broadcast %cst_69 : f32 to vector<8x32xf32>
    %225 = arith.addf %223, %224 : vector<8x32xf32>
    %226 = arith.mulf %215, %217 : vector<8x32xf32>
    %227 = vector.extract_strided_slice %207 {offsets = [0, 32], sizes = [8, 32], strides = [1, 1]} : vector<8x128xf32> to vector<8x32xf32>
    %cst_70 = arith.constant 5.000000e-01 : f32
    %228 = vector.broadcast %cst_70 : f32 to vector<8x32xf32>
    %229 = arith.mulf %228, %227 : vector<8x32xf32>
    %230 = math.tanh %229 : vector<8x32xf32>
    %cst_71 = arith.constant 5.000000e-01 : f32
    %231 = vector.broadcast %cst_71 : f32 to vector<8x32xf32>
    %232 = arith.mulf %231, %230 : vector<8x32xf32>
    %cst_72 = arith.constant 5.000000e-01 : f32
    %233 = vector.broadcast %cst_72 : f32 to vector<8x32xf32>
    %234 = arith.addf %232, %233 : vector<8x32xf32>
    %235 = arith.mulf %234, %201 : vector<8x32xf32>
    %236 = arith.addf %235, %226 : vector<8x32xf32>
    %237 = math.tanh %236 : vector<8x32xf32>
    %238 = arith.mulf %225, %237 : vector<8x32xf32>
    %239 = vector.extract_strided_slice %5 {offsets = [56, 0], sizes = [8, 128], strides = [1, 1]} : vector<64x128xf32> to vector<8x128xf32>
    %240 = arith.truncf %238 : vector<8x32xf32> to vector<8x32xbf16>
    %cst_73 = arith.constant dense<0.000000e+00> : vector<8x128xf32>
    %241 = tpu.matmul %240, %6, %cst_73 {dimension_numbers = #tpu.dot_dimension_numbers<[1], [0], [0], [1], [0, 0, 1, 1], [], []>} : vector<8x32xbf16>, vector<32x128xbf16>, vector<8x128xf32> -> vector<8x128xf32>
    %242 = arith.addf %239, %241 : vector<8x128xf32>
    %243 = vector.extract_strided_slice %242 {offsets = [0, 0], sizes = [8, 32], strides = [1, 1]} : vector<8x128xf32> to vector<8x32xf32>
    %cst_74 = arith.constant 5.000000e-01 : f32
    %244 = vector.broadcast %cst_74 : f32 to vector<8x32xf32>
    %245 = arith.mulf %244, %243 : vector<8x32xf32>
    %246 = math.tanh %245 : vector<8x32xf32>
    %cst_75 = arith.constant 5.000000e-01 : f32
    %247 = vector.broadcast %cst_75 : f32 to vector<8x32xf32>
    %248 = arith.mulf %247, %246 : vector<8x32xf32>
    %cst_76 = arith.constant 5.000000e-01 : f32
    %249 = vector.broadcast %cst_76 : f32 to vector<8x32xf32>
    %250 = arith.addf %248, %249 : vector<8x32xf32>
    %251 = vector.extract_strided_slice %242 {offsets = [0, 64], sizes = [8, 32], strides = [1, 1]} : vector<8x128xf32> to vector<8x32xf32>
    %252 = math.tanh %251 : vector<8x32xf32>
    %253 = vector.extract_strided_slice %242 {offsets = [0, 96], sizes = [8, 32], strides = [1, 1]} : vector<8x128xf32> to vector<8x32xf32>
    %cst_77 = arith.constant 5.000000e-01 : f32
    %254 = vector.broadcast %cst_77 : f32 to vector<8x32xf32>
    %255 = arith.mulf %254, %253 : vector<8x32xf32>
    %256 = math.tanh %255 : vector<8x32xf32>
    %cst_78 = arith.constant 5.000000e-01 : f32
    %257 = vector.broadcast %cst_78 : f32 to vector<8x32xf32>
    %258 = arith.mulf %257, %256 : vector<8x32xf32>
    %cst_79 = arith.constant 5.000000e-01 : f32
    %259 = vector.broadcast %cst_79 : f32 to vector<8x32xf32>
    %260 = arith.addf %258, %259 : vector<8x32xf32>
    %261 = arith.mulf %250, %252 : vector<8x32xf32>
    %262 = vector.extract_strided_slice %242 {offsets = [0, 32], sizes = [8, 32], strides = [1, 1]} : vector<8x128xf32> to vector<8x32xf32>
    %cst_80 = arith.constant 5.000000e-01 : f32
    %263 = vector.broadcast %cst_80 : f32 to vector<8x32xf32>
    %264 = arith.mulf %263, %262 : vector<8x32xf32>
    %265 = math.tanh %264 : vector<8x32xf32>
    %cst_81 = arith.constant 5.000000e-01 : f32
    %266 = vector.broadcast %cst_81 : f32 to vector<8x32xf32>
    %267 = arith.mulf %266, %265 : vector<8x32xf32>
    %cst_82 = arith.constant 5.000000e-01 : f32
    %268 = vector.broadcast %cst_82 : f32 to vector<8x32xf32>
    %269 = arith.addf %267, %268 : vector<8x32xf32>
    %270 = arith.mulf %269, %236 : vector<8x32xf32>
    %271 = arith.addf %270, %261 : vector<8x32xf32>
    %272 = math.tanh %271 : vector<8x32xf32>
    %273 = arith.mulf %260, %272 : vector<8x32xf32>
    %c0_83 = arith.constant 0 : index
    %c0_84 = arith.constant 0 : index
    %274 = vector.load %arg4[%c0_83, %c0_84] : memref<64x128xbf16, #tpu.memory_space<vmem>>, vector<64x128xbf16>
    %275 = vector.extract_strided_slice %274 {offsets = [0, 0], sizes = [32, 128], strides = [1, 1]} : vector<64x128xbf16> to vector<32x128xbf16>
    %c0_85 = arith.constant 0 : index
    %c0_86 = arith.constant 0 : index
    %276 = vector.load %arg5[%c0_85, %c0_86] : memref<1x128xf32, #tpu.memory_space<vmem>>, vector<1x128xf32>
    %277 = arith.truncf %28 : vector<8x32xf32> to vector<8x32xbf16>
    %cst_87 = arith.constant dense<0.000000e+00> : vector<8x128xf32>
    %278 = tpu.matmul %277, %275, %cst_87 {dimension_numbers = #tpu.dot_dimension_numbers<[1], [0], [0], [1], [0, 0, 1, 1], [], []>} : vector<8x32xbf16>, vector<32x128xbf16>, vector<8x128xf32> -> vector<8x128xf32>
    %279 = vector.broadcast %276 : vector<1x128xf32> to vector<8x128xf32>
    %280 = arith.addf %278, %279 : vector<8x128xf32>
    %281 = vector.extract_strided_slice %280 {offsets = [0, 0], sizes = [8, 32], strides = [1, 1]} : vector<8x128xf32> to vector<8x32xf32>
    %cst_88 = arith.constant 5.000000e-01 : f32
    %282 = vector.broadcast %cst_88 : f32 to vector<8x32xf32>
    %283 = arith.mulf %282, %281 : vector<8x32xf32>
    %284 = math.tanh %283 : vector<8x32xf32>
    %cst_89 = arith.constant 5.000000e-01 : f32
    %285 = vector.broadcast %cst_89 : f32 to vector<8x32xf32>
    %286 = arith.mulf %285, %284 : vector<8x32xf32>
    %cst_90 = arith.constant 5.000000e-01 : f32
    %287 = vector.broadcast %cst_90 : f32 to vector<8x32xf32>
    %288 = arith.addf %286, %287 : vector<8x32xf32>
    %289 = vector.extract_strided_slice %280 {offsets = [0, 64], sizes = [8, 32], strides = [1, 1]} : vector<8x128xf32> to vector<8x32xf32>
    %290 = math.tanh %289 : vector<8x32xf32>
    %291 = vector.extract_strided_slice %280 {offsets = [0, 96], sizes = [8, 32], strides = [1, 1]} : vector<8x128xf32> to vector<8x32xf32>
    %cst_91 = arith.constant 5.000000e-01 : f32
    %292 = vector.broadcast %cst_91 : f32 to vector<8x32xf32>
    %293 = arith.mulf %292, %291 : vector<8x32xf32>
    %294 = math.tanh %293 : vector<8x32xf32>
    %cst_92 = arith.constant 5.000000e-01 : f32
    %295 = vector.broadcast %cst_92 : f32 to vector<8x32xf32>
    %296 = arith.mulf %295, %294 : vector<8x32xf32>
    %cst_93 = arith.constant 5.000000e-01 : f32
    %297 = vector.broadcast %cst_93 : f32 to vector<8x32xf32>
    %298 = arith.addf %296, %297 : vector<8x32xf32>
    %299 = arith.mulf %288, %290 : vector<8x32xf32>
    %300 = math.tanh %299 : vector<8x32xf32>
    %301 = arith.mulf %298, %300 : vector<8x32xf32>
    %302 = arith.truncf %63 : vector<8x32xf32> to vector<8x32xbf16>
    %303 = arith.truncf %301 : vector<8x32xf32> to vector<8x32xbf16>
    %304 = tpu.concatenate %302, %303 in 1 : vector<8x32xbf16>, vector<8x32xbf16> -> vector<8x64xbf16>
    %cst_94 = arith.constant dense<0.000000e+00> : vector<8x128xf32>
    %305 = tpu.matmul %304, %274, %cst_94 {dimension_numbers = #tpu.dot_dimension_numbers<[1], [0], [0], [1], [0, 0, 1, 1], [], []>} : vector<8x64xbf16>, vector<64x128xbf16>, vector<8x128xf32> -> vector<8x128xf32>
    %306 = vector.broadcast %276 : vector<1x128xf32> to vector<8x128xf32>
    %307 = arith.addf %305, %306 : vector<8x128xf32>
    %308 = vector.extract_strided_slice %307 {offsets = [0, 0], sizes = [8, 32], strides = [1, 1]} : vector<8x128xf32> to vector<8x32xf32>
    %cst_95 = arith.constant 5.000000e-01 : f32
    %309 = vector.broadcast %cst_95 : f32 to vector<8x32xf32>
    %310 = arith.mulf %309, %308 : vector<8x32xf32>
    %311 = math.tanh %310 : vector<8x32xf32>
    %cst_96 = arith.constant 5.000000e-01 : f32
    %312 = vector.broadcast %cst_96 : f32 to vector<8x32xf32>
    %313 = arith.mulf %312, %311 : vector<8x32xf32>
    %cst_97 = arith.constant 5.000000e-01 : f32
    %314 = vector.broadcast %cst_97 : f32 to vector<8x32xf32>
    %315 = arith.addf %313, %314 : vector<8x32xf32>
    %316 = vector.extract_strided_slice %307 {offsets = [0, 64], sizes = [8, 32], strides = [1, 1]} : vector<8x128xf32> to vector<8x32xf32>
    %317 = math.tanh %316 : vector<8x32xf32>
    %318 = vector.extract_strided_slice %307 {offsets = [0, 96], sizes = [8, 32], strides = [1, 1]} : vector<8x128xf32> to vector<8x32xf32>
    %cst_98 = arith.constant 5.000000e-01 : f32
    %319 = vector.broadcast %cst_98 : f32 to vector<8x32xf32>
    %320 = arith.mulf %319, %318 : vector<8x32xf32>
    %321 = math.tanh %320 : vector<8x32xf32>
    %cst_99 = arith.constant 5.000000e-01 : f32
    %322 = vector.broadcast %cst_99 : f32 to vector<8x32xf32>
    %323 = arith.mulf %322, %321 : vector<8x32xf32>
    %cst_100 = arith.constant 5.000000e-01 : f32
    %324 = vector.broadcast %cst_100 : f32 to vector<8x32xf32>
    %325 = arith.addf %323, %324 : vector<8x32xf32>
    %326 = arith.mulf %315, %317 : vector<8x32xf32>
    %327 = vector.extract_strided_slice %307 {offsets = [0, 32], sizes = [8, 32], strides = [1, 1]} : vector<8x128xf32> to vector<8x32xf32>
    %cst_101 = arith.constant 5.000000e-01 : f32
    %328 = vector.broadcast %cst_101 : f32 to vector<8x32xf32>
    %329 = arith.mulf %328, %327 : vector<8x32xf32>
    %330 = math.tanh %329 : vector<8x32xf32>
    %cst_102 = arith.constant 5.000000e-01 : f32
    %331 = vector.broadcast %cst_102 : f32 to vector<8x32xf32>
    %332 = arith.mulf %331, %330 : vector<8x32xf32>
    %cst_103 = arith.constant 5.000000e-01 : f32
    %333 = vector.broadcast %cst_103 : f32 to vector<8x32xf32>
    %334 = arith.addf %332, %333 : vector<8x32xf32>
    %335 = arith.mulf %334, %299 : vector<8x32xf32>
    %336 = arith.addf %335, %326 : vector<8x32xf32>
    %337 = math.tanh %336 : vector<8x32xf32>
    %338 = arith.mulf %325, %337 : vector<8x32xf32>
    %339 = arith.truncf %98 : vector<8x32xf32> to vector<8x32xbf16>
    %340 = arith.truncf %338 : vector<8x32xf32> to vector<8x32xbf16>
    %341 = tpu.concatenate %339, %340 in 1 : vector<8x32xbf16>, vector<8x32xbf16> -> vector<8x64xbf16>
    %cst_104 = arith.constant dense<0.000000e+00> : vector<8x128xf32>
    %342 = tpu.matmul %341, %274, %cst_104 {dimension_numbers = #tpu.dot_dimension_numbers<[1], [0], [0], [1], [0, 0, 1, 1], [], []>} : vector<8x64xbf16>, vector<64x128xbf16>, vector<8x128xf32> -> vector<8x128xf32>
    %343 = vector.broadcast %276 : vector<1x128xf32> to vector<8x128xf32>
    %344 = arith.addf %342, %343 : vector<8x128xf32>
    %345 = vector.extract_strided_slice %344 {offsets = [0, 0], sizes = [8, 32], strides = [1, 1]} : vector<8x128xf32> to vector<8x32xf32>
    %cst_105 = arith.constant 5.000000e-01 : f32
    %346 = vector.broadcast %cst_105 : f32 to vector<8x32xf32>
    %347 = arith.mulf %346, %345 : vector<8x32xf32>
    %348 = math.tanh %347 : vector<8x32xf32>
    %cst_106 = arith.constant 5.000000e-01 : f32
    %349 = vector.broadcast %cst_106 : f32 to vector<8x32xf32>
    %350 = arith.mulf %349, %348 : vector<8x32xf32>
    %cst_107 = arith.constant 5.000000e-01 : f32
    %351 = vector.broadcast %cst_107 : f32 to vector<8x32xf32>
    %352 = arith.addf %350, %351 : vector<8x32xf32>
    %353 = vector.extract_strided_slice %344 {offsets = [0, 64], sizes = [8, 32], strides = [1, 1]} : vector<8x128xf32> to vector<8x32xf32>
    %354 = math.tanh %353 : vector<8x32xf32>
    %355 = vector.extract_strided_slice %344 {offsets = [0, 96], sizes = [8, 32], strides = [1, 1]} : vector<8x128xf32> to vector<8x32xf32>
    %cst_108 = arith.constant 5.000000e-01 : f32
    %356 = vector.broadcast %cst_108 : f32 to vector<8x32xf32>
    %357 = arith.mulf %356, %355 : vector<8x32xf32>
    %358 = math.tanh %357 : vector<8x32xf32>
    %cst_109 = arith.constant 5.000000e-01 : f32
    %359 = vector.broadcast %cst_109 : f32 to vector<8x32xf32>
    %360 = arith.mulf %359, %358 : vector<8x32xf32>
    %cst_110 = arith.constant 5.000000e-01 : f32
    %361 = vector.broadcast %cst_110 : f32 to vector<8x32xf32>
    %362 = arith.addf %360, %361 : vector<8x32xf32>
    %363 = arith.mulf %352, %354 : vector<8x32xf32>
    %364 = vector.extract_strided_slice %344 {offsets = [0, 32], sizes = [8, 32], strides = [1, 1]} : vector<8x128xf32> to vector<8x32xf32>
    %cst_111 = arith.constant 5.000000e-01 : f32
    %365 = vector.broadcast %cst_111 : f32 to vector<8x32xf32>
    %366 = arith.mulf %365, %364 : vector<8x32xf32>
    %367 = math.tanh %366 : vector<8x32xf32>
    %cst_112 = arith.constant 5.000000e-01 : f32
    %368 = vector.broadcast %cst_112 : f32 to vector<8x32xf32>
    %369 = arith.mulf %368, %367 : vector<8x32xf32>
    %cst_113 = arith.constant 5.000000e-01 : f32
    %370 = vector.broadcast %cst_113 : f32 to vector<8x32xf32>
    %371 = arith.addf %369, %370 : vector<8x32xf32>
    %372 = arith.mulf %371, %336 : vector<8x32xf32>
    %373 = arith.addf %372, %363 : vector<8x32xf32>
    %374 = math.tanh %373 : vector<8x32xf32>
    %375 = arith.mulf %362, %374 : vector<8x32xf32>
    %376 = arith.truncf %133 : vector<8x32xf32> to vector<8x32xbf16>
    %377 = arith.truncf %375 : vector<8x32xf32> to vector<8x32xbf16>
    %378 = tpu.concatenate %376, %377 in 1 : vector<8x32xbf16>, vector<8x32xbf16> -> vector<8x64xbf16>
    %cst_114 = arith.constant dense<0.000000e+00> : vector<8x128xf32>
    %379 = tpu.matmul %378, %274, %cst_114 {dimension_numbers = #tpu.dot_dimension_numbers<[1], [0], [0], [1], [0, 0, 1, 1], [], []>} : vector<8x64xbf16>, vector<64x128xbf16>, vector<8x128xf32> -> vector<8x128xf32>
    %380 = vector.broadcast %276 : vector<1x128xf32> to vector<8x128xf32>
    %381 = arith.addf %379, %380 : vector<8x128xf32>
    %382 = vector.extract_strided_slice %381 {offsets = [0, 0], sizes = [8, 32], strides = [1, 1]} : vector<8x128xf32> to vector<8x32xf32>
    %cst_115 = arith.constant 5.000000e-01 : f32
    %383 = vector.broadcast %cst_115 : f32 to vector<8x32xf32>
    %384 = arith.mulf %383, %382 : vector<8x32xf32>
    %385 = math.tanh %384 : vector<8x32xf32>
    %cst_116 = arith.constant 5.000000e-01 : f32
    %386 = vector.broadcast %cst_116 : f32 to vector<8x32xf32>
    %387 = arith.mulf %386, %385 : vector<8x32xf32>
    %cst_117 = arith.constant 5.000000e-01 : f32
    %388 = vector.broadcast %cst_117 : f32 to vector<8x32xf32>
    %389 = arith.addf %387, %388 : vector<8x32xf32>
    %390 = vector.extract_strided_slice %381 {offsets = [0, 64], sizes = [8, 32], strides = [1, 1]} : vector<8x128xf32> to vector<8x32xf32>
    %391 = math.tanh %390 : vector<8x32xf32>
    %392 = vector.extract_strided_slice %381 {offsets = [0, 96], sizes = [8, 32], strides = [1, 1]} : vector<8x128xf32> to vector<8x32xf32>
    %cst_118 = arith.constant 5.000000e-01 : f32
    %393 = vector.broadcast %cst_118 : f32 to vector<8x32xf32>
    %394 = arith.mulf %393, %392 : vector<8x32xf32>
    %395 = math.tanh %394 : vector<8x32xf32>
    %cst_119 = arith.constant 5.000000e-01 : f32
    %396 = vector.broadcast %cst_119 : f32 to vector<8x32xf32>
    %397 = arith.mulf %396, %395 : vector<8x32xf32>
    %cst_120 = arith.constant 5.000000e-01 : f32
    %398 = vector.broadcast %cst_120 : f32 to vector<8x32xf32>
    %399 = arith.addf %397, %398 : vector<8x32xf32>
    %400 = arith.mulf %389, %391 : vector<8x32xf32>
    %401 = vector.extract_strided_slice %381 {offsets = [0, 32], sizes = [8, 32], strides = [1, 1]} : vector<8x128xf32> to vector<8x32xf32>
    %cst_121 = arith.constant 5.000000e-01 : f32
    %402 = vector.broadcast %cst_121 : f32 to vector<8x32xf32>
    %403 = arith.mulf %402, %401 : vector<8x32xf32>
    %404 = math.tanh %403 : vector<8x32xf32>
    %cst_122 = arith.constant 5.000000e-01 : f32
    %405 = vector.broadcast %cst_122 : f32 to vector<8x32xf32>
    %406 = arith.mulf %405, %404 : vector<8x32xf32>
    %cst_123 = arith.constant 5.000000e-01 : f32
    %407 = vector.broadcast %cst_123 : f32 to vector<8x32xf32>
    %408 = arith.addf %406, %407 : vector<8x32xf32>
    %409 = arith.mulf %408, %373 : vector<8x32xf32>
    %410 = arith.addf %409, %400 : vector<8x32xf32>
    %411 = math.tanh %410 : vector<8x32xf32>
    %412 = arith.mulf %399, %411 : vector<8x32xf32>
    %413 = arith.truncf %168 : vector<8x32xf32> to vector<8x32xbf16>
    %414 = arith.truncf %412 : vector<8x32xf32> to vector<8x32xbf16>
    %415 = tpu.concatenate %413, %414 in 1 : vector<8x32xbf16>, vector<8x32xbf16> -> vector<8x64xbf16>
    %cst_124 = arith.constant dense<0.000000e+00> : vector<8x128xf32>
    %416 = tpu.matmul %415, %274, %cst_124 {dimension_numbers = #tpu.dot_dimension_numbers<[1], [0], [0], [1], [0, 0, 1, 1], [], []>} : vector<8x64xbf16>, vector<64x128xbf16>, vector<8x128xf32> -> vector<8x128xf32>
    %417 = vector.broadcast %276 : vector<1x128xf32> to vector<8x128xf32>
    %418 = arith.addf %416, %417 : vector<8x128xf32>
    %419 = vector.extract_strided_slice %418 {offsets = [0, 0], sizes = [8, 32], strides = [1, 1]} : vector<8x128xf32> to vector<8x32xf32>
    %cst_125 = arith.constant 5.000000e-01 : f32
    %420 = vector.broadcast %cst_125 : f32 to vector<8x32xf32>
    %421 = arith.mulf %420, %419 : vector<8x32xf32>
    %422 = math.tanh %421 : vector<8x32xf32>
    %cst_126 = arith.constant 5.000000e-01 : f32
    %423 = vector.broadcast %cst_126 : f32 to vector<8x32xf32>
    %424 = arith.mulf %423, %422 : vector<8x32xf32>
    %cst_127 = arith.constant 5.000000e-01 : f32
    %425 = vector.broadcast %cst_127 : f32 to vector<8x32xf32>
    %426 = arith.addf %424, %425 : vector<8x32xf32>
    %427 = vector.extract_strided_slice %418 {offsets = [0, 64], sizes = [8, 32], strides = [1, 1]} : vector<8x128xf32> to vector<8x32xf32>
    %428 = math.tanh %427 : vector<8x32xf32>
    %429 = vector.extract_strided_slice %418 {offsets = [0, 96], sizes = [8, 32], strides = [1, 1]} : vector<8x128xf32> to vector<8x32xf32>
    %cst_128 = arith.constant 5.000000e-01 : f32
    %430 = vector.broadcast %cst_128 : f32 to vector<8x32xf32>
    %431 = arith.mulf %430, %429 : vector<8x32xf32>
    %432 = math.tanh %431 : vector<8x32xf32>
    %cst_129 = arith.constant 5.000000e-01 : f32
    %433 = vector.broadcast %cst_129 : f32 to vector<8x32xf32>
    %434 = arith.mulf %433, %432 : vector<8x32xf32>
    %cst_130 = arith.constant 5.000000e-01 : f32
    %435 = vector.broadcast %cst_130 : f32 to vector<8x32xf32>
    %436 = arith.addf %434, %435 : vector<8x32xf32>
    %437 = arith.mulf %426, %428 : vector<8x32xf32>
    %438 = vector.extract_strided_slice %418 {offsets = [0, 32], sizes = [8, 32], strides = [1, 1]} : vector<8x128xf32> to vector<8x32xf32>
    %cst_131 = arith.constant 5.000000e-01 : f32
    %439 = vector.broadcast %cst_131 : f32 to vector<8x32xf32>
    %440 = arith.mulf %439, %438 : vector<8x32xf32>
    %441 = math.tanh %440 : vector<8x32xf32>
    %cst_132 = arith.constant 5.000000e-01 : f32
    %442 = vector.broadcast %cst_132 : f32 to vector<8x32xf32>
    %443 = arith.mulf %442, %441 : vector<8x32xf32>
    %cst_133 = arith.constant 5.000000e-01 : f32
    %444 = vector.broadcast %cst_133 : f32 to vector<8x32xf32>
    %445 = arith.addf %443, %444 : vector<8x32xf32>
    %446 = arith.mulf %445, %410 : vector<8x32xf32>
    %447 = arith.addf %446, %437 : vector<8x32xf32>
    %448 = math.tanh %447 : vector<8x32xf32>
    %449 = arith.mulf %436, %448 : vector<8x32xf32>
    %450 = arith.truncf %203 : vector<8x32xf32> to vector<8x32xbf16>
    %451 = arith.truncf %449 : vector<8x32xf32> to vector<8x32xbf16>
    %452 = tpu.concatenate %450, %451 in 1 : vector<8x32xbf16>, vector<8x32xbf16> -> vector<8x64xbf16>
    %cst_134 = arith.constant dense<0.000000e+00> : vector<8x128xf32>
    %453 = tpu.matmul %452, %274, %cst_134 {dimension_numbers = #tpu.dot_dimension_numbers<[1], [0], [0], [1], [0, 0, 1, 1], [], []>} : vector<8x64xbf16>, vector<64x128xbf16>, vector<8x128xf32> -> vector<8x128xf32>
    %454 = vector.broadcast %276 : vector<1x128xf32> to vector<8x128xf32>
    %455 = arith.addf %453, %454 : vector<8x128xf32>
    %456 = vector.extract_strided_slice %455 {offsets = [0, 0], sizes = [8, 32], strides = [1, 1]} : vector<8x128xf32> to vector<8x32xf32>
    %cst_135 = arith.constant 5.000000e-01 : f32
    %457 = vector.broadcast %cst_135 : f32 to vector<8x32xf32>
    %458 = arith.mulf %457, %456 : vector<8x32xf32>
    %459 = math.tanh %458 : vector<8x32xf32>
    %cst_136 = arith.constant 5.000000e-01 : f32
    %460 = vector.broadcast %cst_136 : f32 to vector<8x32xf32>
    %461 = arith.mulf %460, %459 : vector<8x32xf32>
    %cst_137 = arith.constant 5.000000e-01 : f32
    %462 = vector.broadcast %cst_137 : f32 to vector<8x32xf32>
    %463 = arith.addf %461, %462 : vector<8x32xf32>
    %464 = vector.extract_strided_slice %455 {offsets = [0, 64], sizes = [8, 32], strides = [1, 1]} : vector<8x128xf32> to vector<8x32xf32>
    %465 = math.tanh %464 : vector<8x32xf32>
    %466 = vector.extract_strided_slice %455 {offsets = [0, 96], sizes = [8, 32], strides = [1, 1]} : vector<8x128xf32> to vector<8x32xf32>
    %cst_138 = arith.constant 5.000000e-01 : f32
    %467 = vector.broadcast %cst_138 : f32 to vector<8x32xf32>
    %468 = arith.mulf %467, %466 : vector<8x32xf32>
    %469 = math.tanh %468 : vector<8x32xf32>
    %cst_139 = arith.constant 5.000000e-01 : f32
    %470 = vector.broadcast %cst_139 : f32 to vector<8x32xf32>
    %471 = arith.mulf %470, %469 : vector<8x32xf32>
    %cst_140 = arith.constant 5.000000e-01 : f32
    %472 = vector.broadcast %cst_140 : f32 to vector<8x32xf32>
    %473 = arith.addf %471, %472 : vector<8x32xf32>
    %474 = arith.mulf %463, %465 : vector<8x32xf32>
    %475 = vector.extract_strided_slice %455 {offsets = [0, 32], sizes = [8, 32], strides = [1, 1]} : vector<8x128xf32> to vector<8x32xf32>
    %cst_141 = arith.constant 5.000000e-01 : f32
    %476 = vector.broadcast %cst_141 : f32 to vector<8x32xf32>
    %477 = arith.mulf %476, %475 : vector<8x32xf32>
    %478 = math.tanh %477 : vector<8x32xf32>
    %cst_142 = arith.constant 5.000000e-01 : f32
    %479 = vector.broadcast %cst_142 : f32 to vector<8x32xf32>
    %480 = arith.mulf %479, %478 : vector<8x32xf32>
    %cst_143 = arith.constant 5.000000e-01 : f32
    %481 = vector.broadcast %cst_143 : f32 to vector<8x32xf32>
    %482 = arith.addf %480, %481 : vector<8x32xf32>
    %483 = arith.mulf %482, %447 : vector<8x32xf32>
    %484 = arith.addf %483, %474 : vector<8x32xf32>
    %485 = math.tanh %484 : vector<8x32xf32>
    %486 = arith.mulf %473, %485 : vector<8x32xf32>
    %487 = arith.truncf %238 : vector<8x32xf32> to vector<8x32xbf16>
    %488 = arith.truncf %486 : vector<8x32xf32> to vector<8x32xbf16>
    %489 = tpu.concatenate %487, %488 in 1 : vector<8x32xbf16>, vector<8x32xbf16> -> vector<8x64xbf16>
    %cst_144 = arith.constant dense<0.000000e+00> : vector<8x128xf32>
    %490 = tpu.matmul %489, %274, %cst_144 {dimension_numbers = #tpu.dot_dimension_numbers<[1], [0], [0], [1], [0, 0, 1, 1], [], []>} : vector<8x64xbf16>, vector<64x128xbf16>, vector<8x128xf32> -> vector<8x128xf32>
    %491 = vector.broadcast %276 : vector<1x128xf32> to vector<8x128xf32>
    %492 = arith.addf %490, %491 : vector<8x128xf32>
    %493 = vector.extract_strided_slice %492 {offsets = [0, 0], sizes = [8, 32], strides = [1, 1]} : vector<8x128xf32> to vector<8x32xf32>
    %cst_145 = arith.constant 5.000000e-01 : f32
    %494 = vector.broadcast %cst_145 : f32 to vector<8x32xf32>
    %495 = arith.mulf %494, %493 : vector<8x32xf32>
    %496 = math.tanh %495 : vector<8x32xf32>
    %cst_146 = arith.constant 5.000000e-01 : f32
    %497 = vector.broadcast %cst_146 : f32 to vector<8x32xf32>
    %498 = arith.mulf %497, %496 : vector<8x32xf32>
    %cst_147 = arith.constant 5.000000e-01 : f32
    %499 = vector.broadcast %cst_147 : f32 to vector<8x32xf32>
    %500 = arith.addf %498, %499 : vector<8x32xf32>
    %501 = vector.extract_strided_slice %492 {offsets = [0, 64], sizes = [8, 32], strides = [1, 1]} : vector<8x128xf32> to vector<8x32xf32>
    %502 = math.tanh %501 : vector<8x32xf32>
    %503 = vector.extract_strided_slice %492 {offsets = [0, 96], sizes = [8, 32], strides = [1, 1]} : vector<8x128xf32> to vector<8x32xf32>
    %cst_148 = arith.constant 5.000000e-01 : f32
    %504 = vector.broadcast %cst_148 : f32 to vector<8x32xf32>
    %505 = arith.mulf %504, %503 : vector<8x32xf32>
    %506 = math.tanh %505 : vector<8x32xf32>
    %cst_149 = arith.constant 5.000000e-01 : f32
    %507 = vector.broadcast %cst_149 : f32 to vector<8x32xf32>
    %508 = arith.mulf %507, %506 : vector<8x32xf32>
    %cst_150 = arith.constant 5.000000e-01 : f32
    %509 = vector.broadcast %cst_150 : f32 to vector<8x32xf32>
    %510 = arith.addf %508, %509 : vector<8x32xf32>
    %511 = arith.mulf %500, %502 : vector<8x32xf32>
    %512 = vector.extract_strided_slice %492 {offsets = [0, 32], sizes = [8, 32], strides = [1, 1]} : vector<8x128xf32> to vector<8x32xf32>
    %cst_151 = arith.constant 5.000000e-01 : f32
    %513 = vector.broadcast %cst_151 : f32 to vector<8x32xf32>
    %514 = arith.mulf %513, %512 : vector<8x32xf32>
    %515 = math.tanh %514 : vector<8x32xf32>
    %cst_152 = arith.constant 5.000000e-01 : f32
    %516 = vector.broadcast %cst_152 : f32 to vector<8x32xf32>
    %517 = arith.mulf %516, %515 : vector<8x32xf32>
    %cst_153 = arith.constant 5.000000e-01 : f32
    %518 = vector.broadcast %cst_153 : f32 to vector<8x32xf32>
    %519 = arith.addf %517, %518 : vector<8x32xf32>
    %520 = arith.mulf %519, %484 : vector<8x32xf32>
    %521 = arith.addf %520, %511 : vector<8x32xf32>
    %522 = math.tanh %521 : vector<8x32xf32>
    %523 = arith.mulf %510, %522 : vector<8x32xf32>
    %524 = arith.truncf %273 : vector<8x32xf32> to vector<8x32xbf16>
    %525 = arith.truncf %523 : vector<8x32xf32> to vector<8x32xbf16>
    %526 = tpu.concatenate %524, %525 in 1 : vector<8x32xbf16>, vector<8x32xbf16> -> vector<8x64xbf16>
    %cst_154 = arith.constant dense<0.000000e+00> : vector<8x128xf32>
    %527 = tpu.matmul %526, %274, %cst_154 {dimension_numbers = #tpu.dot_dimension_numbers<[1], [0], [0], [1], [0, 0, 1, 1], [], []>} : vector<8x64xbf16>, vector<64x128xbf16>, vector<8x128xf32> -> vector<8x128xf32>
    %528 = vector.broadcast %276 : vector<1x128xf32> to vector<8x128xf32>
    %529 = arith.addf %527, %528 : vector<8x128xf32>
    %530 = vector.extract_strided_slice %529 {offsets = [0, 0], sizes = [8, 32], strides = [1, 1]} : vector<8x128xf32> to vector<8x32xf32>
    %cst_155 = arith.constant 5.000000e-01 : f32
    %531 = vector.broadcast %cst_155 : f32 to vector<8x32xf32>
    %532 = arith.mulf %531, %530 : vector<8x32xf32>
    %533 = math.tanh %532 : vector<8x32xf32>
    %cst_156 = arith.constant 5.000000e-01 : f32
    %534 = vector.broadcast %cst_156 : f32 to vector<8x32xf32>
    %535 = arith.mulf %534, %533 : vector<8x32xf32>
    %cst_157 = arith.constant 5.000000e-01 : f32
    %536 = vector.broadcast %cst_157 : f32 to vector<8x32xf32>
    %537 = arith.addf %535, %536 : vector<8x32xf32>
    %538 = vector.extract_strided_slice %529 {offsets = [0, 64], sizes = [8, 32], strides = [1, 1]} : vector<8x128xf32> to vector<8x32xf32>
    %539 = math.tanh %538 : vector<8x32xf32>
    %540 = vector.extract_strided_slice %529 {offsets = [0, 96], sizes = [8, 32], strides = [1, 1]} : vector<8x128xf32> to vector<8x32xf32>
    %cst_158 = arith.constant 5.000000e-01 : f32
    %541 = vector.broadcast %cst_158 : f32 to vector<8x32xf32>
    %542 = arith.mulf %541, %540 : vector<8x32xf32>
    %543 = math.tanh %542 : vector<8x32xf32>
    %cst_159 = arith.constant 5.000000e-01 : f32
    %544 = vector.broadcast %cst_159 : f32 to vector<8x32xf32>
    %545 = arith.mulf %544, %543 : vector<8x32xf32>
    %cst_160 = arith.constant 5.000000e-01 : f32
    %546 = vector.broadcast %cst_160 : f32 to vector<8x32xf32>
    %547 = arith.addf %545, %546 : vector<8x32xf32>
    %548 = arith.mulf %537, %539 : vector<8x32xf32>
    %549 = vector.extract_strided_slice %529 {offsets = [0, 32], sizes = [8, 32], strides = [1, 1]} : vector<8x128xf32> to vector<8x32xf32>
    %cst_161 = arith.constant 5.000000e-01 : f32
    %550 = vector.broadcast %cst_161 : f32 to vector<8x32xf32>
    %551 = arith.mulf %550, %549 : vector<8x32xf32>
    %552 = math.tanh %551 : vector<8x32xf32>
    %cst_162 = arith.constant 5.000000e-01 : f32
    %553 = vector.broadcast %cst_162 : f32 to vector<8x32xf32>
    %554 = arith.mulf %553, %552 : vector<8x32xf32>
    %cst_163 = arith.constant 5.000000e-01 : f32
    %555 = vector.broadcast %cst_163 : f32 to vector<8x32xf32>
    %556 = arith.addf %554, %555 : vector<8x32xf32>
    %557 = arith.mulf %556, %521 : vector<8x32xf32>
    %558 = arith.addf %557, %548 : vector<8x32xf32>
    %559 = math.tanh %558 : vector<8x32xf32>
    %560 = arith.mulf %547, %559 : vector<8x32xf32>
    %561 = tpu.concatenate %301, %338, %375, %412, %449, %486, %523, %560 in 0 : vector<8x32xf32>, vector<8x32xf32>, vector<8x32xf32>, vector<8x32xf32>, vector<8x32xf32>, vector<8x32xf32>, vector<8x32xf32>, vector<8x32xf32> -> vector<64x32xf32>
    %562 = arith.truncf %561 : vector<64x32xf32> to vector<64x32xbf16>
    %c0_164 = arith.constant 0 : index
    %c0_165 = arith.constant 0 : index
    %563 = vector.load %arg6[%c0_164, %c0_165] : memref<32x128xbf16, #tpu.memory_space<vmem>>, vector<32x128xbf16>
    %cst_166 = arith.constant dense<0.000000e+00> : vector<64x128xf32>
    %564 = tpu.matmul %562, %563, %cst_166 {dimension_numbers = #tpu.dot_dimension_numbers<[1], [0], [0], [1], [0, 0, 1, 1], [], []>} : vector<64x32xbf16>, vector<32x128xbf16>, vector<64x128xf32> -> vector<64x128xf32>
    %c0_167 = arith.constant 0 : index
    %c0_168 = arith.constant 0 : index
    %565 = vector.load %arg7[%c0_167, %c0_168] : memref<1x128xf32, #tpu.memory_space<vmem>>, vector<1x128xf32>
    %566 = vector.broadcast %565 : vector<1x128xf32> to vector<64x128xf32>
    %567 = arith.addf %564, %566 : vector<64x128xf32>
    %cst_169 = arith.constant 5.000000e-01 : f32
    %568 = vector.broadcast %cst_169 : f32 to vector<64x128xf32>
    %569 = arith.mulf %568, %567 : vector<64x128xf32>
    %570 = math.tanh %569 : vector<64x128xf32>
    %cst_170 = arith.constant 5.000000e-01 : f32
    %571 = vector.broadcast %cst_170 : f32 to vector<64x128xf32>
    %572 = arith.mulf %571, %570 : vector<64x128xf32>
    %cst_171 = arith.constant 5.000000e-01 : f32
    %573 = vector.broadcast %cst_171 : f32 to vector<64x128xf32>
    %574 = arith.addf %572, %573 : vector<64x128xf32>
    %c0_172 = arith.constant 0 : index
    %c0_173 = arith.constant 0 : index
    %575 = vector.load %arg8[%c0_172, %c0_173] : memref<64x128xf32, #tpu.memory_space<vmem>>, vector<64x128xf32>
    tpu.vector_store %arg8[%c0_172, %c0_173], %574 {strides = array<i32>} : memref<64x128xf32, #tpu.memory_space<vmem>>, vector<64x128xf32>,
    return
  }
}

</mosaic_0001>

<bundles_post_ra>
// kernel: ann_forward.1
= control target key start
LH: loop header
LB: loop body
LE: loop exit
PB: predicated region body
PF: predicated region fallthrough
CT: control target
= control target key end

     0   :  { %vm79_vm0 = vcmask 1043456   ;;  %vm66_vm1 = vcmask 64512   ;;  %v1839_v15 = vmov 0.0   ;;  %vm1840_vm2 = vmmov 0   ;;  %s1841_s16 = smov 96   ;;  %s2288_s1 = inlined_call_operand.vmem [shape: bf16[8,128], index: 1, kind: input, shape index: {}]   ;;  %s2289_s0 = inlined_call_operand.vmem [shape: bf16[64,8], index: 0, kind: input, shape index: {}]   ;;  %s2290_s3 = inlined_call_operand.vmem [shape: f32[1,128], index: 3, kind: input, shape index: {}]   ;;  %s2291_s2 = inlined_call_operand.vmem [shape: bf16[32,128], index: 2, kind: input, shape index: {}]   ;;  %s2292_s4 = inlined_call_operand.vmem [shape: bf16[64,128], index: 4, kind: input, shape index: {}]   ;;  %s2293_s5 = inlined_call_operand.vmem [shape: f32[1,128], index: 5, kind: input, shape index: {}]   ;;  %s2294_s6 = inlined_call_operand.vmem [shape: bf16[32,128], index: 6, kind: input, shape index: {}]   ;;  %s2295_s7 = inlined_call_operand.vmem [shape: f32[1,128], index: 7, kind: input, shape index: {}]   ;;  %s2296_s8 = inlined_call_operand.vmem [shape: f32[64,128], index: 8, kind: output, shape index: {}]  }
   0x1   :  { %v38_v0 = vld [vmem:[%s2288_s1] sm:$0xf]  ;;  %v1715_v3 = vld [vmem:[%s2289_s0 + $0x8] sm:$0xff]   ;;  %s1838_s1 = smov 64   ;;  %1548 = vmatprep.subr.bf16.mxu1 %v1839_v15  ;;  %1552 = vmatprep.mubr.msk.bf16.mxu1 %vm1840_vm2, %v1839_v15  ;;  %vm184_vm3 = vcmask 261120   ;;  %v1718_v63 = vld [vmem:[%s2289_s0 + $0x10] sm:$0xff]  }
   0x2   :  { %1708 = vmatprep.subr.msk.bf16.mxu0 %vm79_vm0, %v38_v0  ;;  %v81_v1 = vsel %vm79_vm0, %v38_v0, 0  ;;  %v1714_v2 = vld [vmem:[%s2289_s0] sm:$0xff]   ;;  %v1912_v16 = vld [vmem:[%s2291_s2 + $0x8] sm:$0xff]   ;;  %v1719_v0 = vld [vmem:[%s2289_s0 + $0x18] sm:$0xff]   ;;  %vm776_vm4 = vcmask 523264  }
   0x3   :  { %1539 = vmatpush3.bf16.msra.mxu0 %v81_v1  ;;  %1540 = vmatprep.mubr.msk.bf16.mxu0 %vm66_vm1, %v1714_v2  ;;  %v1904_v5 = vld [vmem:[%s2290_s3] ss:$0 sm:$0xff] }
   0x4   :  { %1564 = vmatprep.subr.bf16.mxu0 %v1839_v15  ;;  %1549 = vmatpush3.bf16.msra.mxu1 %v1912_v16  ;;  %v1921_v17 = vld [vmem:[%s2291_s2] sm:$0xff]   ;;  %s1842_s2 = smov 32  }
   0x5   :  { %1550 = vmatprep.subr.bf16.mxu1 %v1839_v15 }
   0x6   :  { %1541 = vmatmul.mubr.msk.bf16.vlgmr.msra.gmra.mxu0 %vm66_vm1, %v1715_v3 }
   0x7   :  { %1565 = vmatpush3.bf16.msra.mxu0 %v1912_v16  ;;  %1544 = vmatprep.mubr.msk.bf16.mxu0 %vm66_vm1, %v1718_v63 }
   0x8   :  { %1566 = vmatprep.subr.bf16.mxu0 %v1839_v15  ;;  %1551 = vmatpush3.bf16.msra.mxu1 %v1921_v17 }
   0x9   :  { %1556 = vmatprep.subr.bf16.mxu1 %v1839_v15 }
   0xb   :  { %1567 = vmatpush3.bf16.msra.mxu0 %v1921_v17 }
   0xc   :  { %1580 = vmatprep.subr.bf16.mxu0 %v1839_v15 }
   0xe   :  { %1545 = vmatmul.mubr.msk.bf16.gmra.mxu0 %vm66_vm1, %v1719_v0 }
   0xf   :  { %1568 = vmatprep.mubr.msk.bf16.mxu0 %vm1840_vm2, %v1839_v15 }
  0xc6   :  { %v1899_v4 = vpop.f32.mrf.mxu0 }
  0xc7   :  { %v126_v47 = vadd.f32 %v1899_v4, %v1904_v5 }
  0xc8   :  { %v117_v6 = vpop.f32.mrf.mxu0 }
  0xc9   :  { %v118_v7 = vadd.f32 %v1904_v5, %v117_v6 }
  0xca   :  { %v1943_v23 = vpop.f32.mrf.mxu0 }
  0xcb   :  { %1726 = vtanh.f32 %v118_v7  ;;  %v152_v9 = vmul.f32 0.5, %v118_v7 }
  0xcc   :  { %v120_v24 = vpop.f32.mrf.mxu0 }
  0xcd   :  { %1728 = vtanh.f32 %v152_v9  ;;  %v121_v25 = vadd.f32 %v1904_v5, %v120_v24 }
  0xce   :  { %v1986_v7 = vpop.f32.mrf.mxu0 }
  0xd8   :  { %v1727_v8 = vpop.eup %1726 }
  0xd9   :  { %158 = vrot.lane.b32.xlu0 %v1727_v8, %s1838_s1  ;;  %v133_v8 = vpop.f32.mrf.mxu0 }
  0xda   :  { %v1729_v10 = vpop.eup %1728 }
  0xdb   :  { %v154_v11 = vmul.f32 0.5, %v1729_v10  ;;  %v1988_v9 = vpop.f32.mrf.mxu0 }
  0xdd   :  { %v155_v12 = vadd.f32 0.5, %v154_v11  ;;  %v1990_v10 = vpop.f32.mrf.mxu0  ;;  %v129_v11 = vadd.f32 %v1943_v23, %v1904_v5 }
 0x14b   :  { %v159_v13 = vpop.permute.xlu0 %158 }
 0x14c   :  { %v161_v14 = vmul.f32 %v159_v13, %v155_v12 }
 0x14e   :  { %1730 = vtanh.f32 %v161_v14 }
 0x15b   :  { %v1731_v18 = vpop.eup %1730 }
 0x15c   :  { %164 = vrot.lane.b32.xlu0 %v1731_v18, %s1841_s16 }
 0x160   :  { %240 = vrot.lane.b32.xlu0 %v161_v14, %s1842_s2 }
 0x1ce   :  { %v165_v19 = vpop.permute.xlu0 %164 }
 0x1cf   :  { %v167_v20 = vmul.f32 %v165_v19, %v155_v12 }
 0x1d1   :  { %v168_v21 = vpack.c.bf16 %v167_v20, %v167_v20 }
 0x1d2   :  { %v241_v38 = vpop.permute.xlu0 %240 }
 0x1d3   :  { %170 = vrot.lane.b32.xlu1 %v168_v21, %s1842_s2 }
 0x245   :  { %v1933_v22 = vpop.permute.xlu1 %170 }
 0x246   :  { %1553 = vmatmul.mubr.msk.bf16.vlgmr.msra.gmra.mxu1 %vm184_vm3, %v1933_v22 }
 0x247   :  { %1557 = vmatpush3.bf16.msra.mxu1 %v1912_v16  ;;  %1560 = vmatprep.mubr.msk.bf16.mxu1 %vm1840_vm2, %v1839_v15 }
 0x248   :  { %1558 = vmatprep.subr.bf16.mxu1 %v1839_v15 }
 0x24b   :  { %1559 = vmatpush3.bf16.msra.mxu1 %v1921_v17 }
 0x24c   :  { %1572 = vmatprep.subr.bf16.mxu1 %v1839_v15 }
 0x306   :  { %v222_v26 = vpop.f32.mrf.mxu1 }
 0x307   :  { %v228_v27 = vadd.f32 %v222_v26, %v121_v25 }
 0x308   :  { %v1554_v28 = vpop.f32.mrf.mxu1 }
 0x309   :  { %1732 = vtanh.f32 %v228_v27  ;;  %v229_v32 = vmul.f32 0.5, %v228_v27 }
 0x30a   :  { %v225_v29 = vpop.f32.mrf.mxu1 }
 0x30b   :  { %1734 = vtanh.f32 %v229_v32 }
 0x30c   :  { %v1555_v30 = vpop.f32.mrf.mxu1 }
 0x316   :  { %v1733_v31 = vpop.eup %1732 }
 0x317   :  { %235 = vrot.lane.b32.xlu1 %v1733_v31, %s1838_s1 }
 0x318   :  { %v1735_v33 = vpop.eup %1734 }
 0x319   :  { %v231_v34 = vmul.f32 0.5, %v1735_v33 }
 0x31b   :  { %v232_v35 = vadd.f32 0.5, %v231_v34 }
 0x31d   :  { %v243_v39 = vmul.f32 %v241_v38, %v232_v35 }
 0x389   :  { %v236_v36 = vpop.permute.xlu1 %235 }
 0x38a   :  { %v238_v37 = vmul.f32 %v236_v36, %v232_v35  ;;  %v134_v36 = vadd.f32 %v1904_v5, %v133_v8 }
 0x38c   :  { %245 = vrot.lane.b32.xlu1 %v238_v37, %s1842_s2 }
 0x3fe   :  { %v246_v40 = vpop.permute.xlu1 %245 }
 0x3ff   :  { %v248_v41 = vadd.f32 %v246_v40, %v243_v39 }
 0x401   :  { %1736 = vtanh.f32 %v248_v41 }
 0x40e   :  { %v1737_v42 = vpop.eup %1736 }
 0x40f   :  { %251 = vrot.lane.b32.xlu0 %v1737_v42, %s1838_s1 }
 0x481   :  { %v252_v43 = vpop.permute.xlu0 %251 }
 0x482   :  { %v254_v44 = vmul.f32 %v252_v43, %v232_v35 }
 0x484   :  { %v255_v45 = vpack.c.bf16 %v254_v44, %v254_v44 }
 0x486   :  { %257 = vrot.lane.b32.xlu1 %v255_v45, %s1842_s2 }
 0x4f8   :  { %v1950_v46 = vpop.permute.xlu1 %257 }
 0x4f9   :  { %1561 = vmatmul.mubr.msk.bf16.vlgmr.msra.gmra.mxu1 %vm184_vm3, %v1950_v46 }
 0x4fa   :  { %1573 = vmatpush3.bf16.msra.mxu1 %v1912_v16  ;;  %1576 = vmatprep.mubr.msk.bf16.mxu1 %vm1840_vm2, %v1839_v15 }
 0x4fb   :  { %1574 = vmatprep.subr.bf16.mxu1 %v1839_v15 }
 0x4fe   :  { %1575 = vmatpush3.bf16.msra.mxu1 %v1921_v17 }
 0x4ff   :  { %1588 = vmatprep.subr.bf16.mxu1 %v1839_v15 }
 0x5b9   :  { %v296_v48 = vpop.f32.mrf.mxu1 }
 0x5ba   :  { %v302_v49 = vadd.f32 %v296_v48, %v126_v47 }
 0x5bb   :  { %v1562_v50 = vpop.f32.mrf.mxu1 }
 0x5bc   :  { %1738 = vtanh.f32 %v302_v49  ;;  %v303_v54 = vmul.f32 0.5, %v302_v49 }
 0x5bd   :  { %v299_v51 = vpop.f32.mrf.mxu1 }
 0x5be   :  { %1740 = vtanh.f32 %v303_v54 }
 0x5bf   :  { %v1563_v52 = vpop.f32.mrf.mxu1 }
 0x5c9   :  { %v1739_v53 = vpop.eup %1738 }
 0x5ca   :  { %309 = vrot.lane.b32.xlu0 %v1739_v53, %s1838_s1 }
 0x5cb   :  { %v1741_v55 = vpop.eup %1740 }
 0x5cc   :  { %v305_v56 = vmul.f32 0.5, %v1741_v55 }
 0x5ce   :  { %v306_v57 = vadd.f32 0.5, %v305_v56 }
 0x5d0   :  { %v313_v60 = vmul.f32 %v306_v57, %v248_v41 }
 0x63c   :  { %v310_v58 = vpop.permute.xlu0 %309 }
 0x63d   :  { %v312_v59 = vmul.f32 %v310_v58, %v306_v57  ;;  %v137_v58 = vadd.f32 %v1904_v5, %v1990_v10 }
 0x63f   :  { %315 = vrot.lane.b32.xlu1 %v312_v59, %s1842_s2 }
 0x6b1   :  { %v316_v61 = vpop.permute.xlu1 %315 }
 0x6b2   :  { %v318_v62 = vadd.f32 %v316_v61, %v313_v60 }
 0x6b4   :  { %1742 = vtanh.f32 %v318_v62 }
 0x6c1   :  { %v1743_v1 = vpop.eup %1742 }
 0x6c2   :  { %321 = vrot.lane.b32.xlu0 %v1743_v1, %s1838_s1 }
 0x734   :  { %v322_v2 = vpop.permute.xlu0 %321 }
 0x735   :  { %v324_v3 = vmul.f32 %v322_v2, %v306_v57 }
 0x737   :  { %v325_v4 = vpack.c.bf16 %v324_v3, %v324_v3 }
 0x739   :  { %327 = vrot.lane.b32.xlu1 %v325_v4, %s1842_s2 }
 0x7ab   :  { %v1976_v6 = vpop.permute.xlu1 %327 }
 0x7ac   :  { %1569 = vmatmul.mubr.msk.bf16.vlgmr.msra.gmra.mxu0 %vm184_vm3, %v1976_v6 }
 0x7ad   :  { %1581 = vmatpush3.bf16.msra.mxu0 %v1912_v16  ;;  %1584 = vmatprep.mubr.msk.bf16.mxu0 %vm1840_vm2, %v1839_v15 }
 0x7ae   :  { %1582 = vmatprep.subr.bf16.mxu0 %v1839_v15 }
 0x7b1   :  { %1583 = vmatpush3.bf16.msra.mxu0 %v1921_v17 }
 0x7b2   :  { %1596 = vmatprep.subr.bf16.mxu0 %v1839_v15 }
 0x86c   :  { %v366_v12 = vpop.f32.mrf.mxu0 }
 0x86d   :  { %v372_v13 = vadd.f32 %v366_v12, %v129_v11 }
 0x86e   :  { %v1570_v14 = vpop.f32.mrf.mxu0 }
 0x86f   :  { %1744 = vtanh.f32 %v372_v13  ;;  %v373_v21 = vmul.f32 0.5, %v372_v13 }
 0x870   :  { %v369_v18 = vpop.f32.mrf.mxu0 }
 0x871   :  { %1746 = vtanh.f32 %v373_v21  ;;  %v2042_v21 = vld [vmem:[%s2292_s4] sm:$0xff]  }
 0x872   :  { %v1571_v19 = vpop.f32.mrf.mxu0 }
 0x873   :  { %v2032_v19 = vld [vmem:[%s2292_s4 + $0x8] sm:$0xff]  }
 0x87c   :  { %v1745_v20 = vpop.eup %1744 }
 0x87d   :  { %379 = vrot.lane.b32.xlu0 %v1745_v20, %s1838_s1 }
 0x87e   :  { %v1747_v24 = vpop.eup %1746 }
 0x87f   :  { %v375_v25 = vmul.f32 0.5, %v1747_v24  ;;  %v142_v24 = vadd.f32 %v1986_v7, %v1904_v5 }
 0x881   :  { %v376_v26 = vadd.f32 0.5, %v375_v25 }
 0x883   :  { %v383_v29 = vmul.f32 %v376_v26, %v318_v62 }
 0x8ef   :  { %v380_v27 = vpop.permute.xlu0 %379 }
 0x8f0   :  { %v382_v28 = vmul.f32 %v380_v27, %v376_v26 }
 0x8f2   :  { %385 = vrot.lane.b32.xlu1 %v382_v28, %s1842_s2 }
 0x964   :  { %v386_v23 = vpop.permute.xlu1 %385 }
 0x965   :  { %v388_v30 = vadd.f32 %v386_v23, %v383_v29  ;;  %v2058_v23 = vld [vmem:[%s2293_s5] ss:$0 sm:$0xff] }
 0x967   :  { %1748 = vtanh.f32 %v388_v30 }
 0x974   :  { %v1749_v31 = vpop.eup %1748 }
 0x975   :  { %391 = vrot.lane.b32.xlu0 %v1749_v31, %s1838_s1 }
 0x9e7   :  { %v392_v32 = vpop.permute.xlu0 %391 }
 0x9e8   :  { %v394_v33 = vmul.f32 %v392_v32, %v376_v26 }
 0x9ea   :  { %v395_v34 = vpack.c.bf16 %v394_v33, %v394_v33 }
 0x9ec   :  { %397 = vrot.lane.b32.xlu1 %v395_v34, %s1842_s2 }
 0xa5e   :  { %v1998_v35 = vpop.permute.xlu1 %397 }
 0xa5f   :  { %1577 = vmatmul.mubr.msk.bf16.vlgmr.msra.gmra.mxu1 %vm184_vm3, %v1998_v35 }
 0xa60   :  { %1589 = vmatpush3.bf16.msra.mxu1 %v1912_v16  ;;  %1592 = vmatprep.mubr.msk.bf16.mxu1 %vm1840_vm2, %v1839_v15 }
 0xa61   :  { %1590 = vmatprep.subr.bf16.mxu1 %v1839_v15 }
 0xa64   :  { %1591 = vmatpush3.bf16.msra.mxu1 %v1921_v17 }
 0xa65   :  { %1604 = vmatprep.subr.bf16.mxu1 %v1839_v15 }
 0xb1f   :  { %v436_v37 = vpop.f32.mrf.mxu1 }
 0xb20   :  { %v442_v38 = vadd.f32 %v436_v37, %v134_v36 }
 0xb21   :  { %v1578_v39 = vpop.f32.mrf.mxu1 }
 0xb22   :  { %1750 = vtanh.f32 %v442_v38  ;;  %v443_v43 = vmul.f32 0.5, %v442_v38 }
 0xb23   :  { %v439_v40 = vpop.f32.mrf.mxu1 }
 0xb24   :  { %1752 = vtanh.f32 %v443_v43 }
 0xb25   :  { %v1579_v41 = vpop.f32.mrf.mxu1 }
 0xb2f   :  { %v1751_v42 = vpop.eup %1750 }
 0xb30   :  { %449 = vrot.lane.b32.xlu0 %v1751_v42, %s1838_s1 }
 0xb31   :  { %v1753_v44 = vpop.eup %1752 }
 0xb32   :  { %v445_v45 = vmul.f32 0.5, %v1753_v44 }
 0xb34   :  { %v446_v47 = vadd.f32 0.5, %v445_v45 }
 0xb36   :  { %v453_v50 = vmul.f32 %v446_v47, %v388_v30 }
 0xba2   :  { %v450_v48 = vpop.permute.xlu0 %449 }
 0xba3   :  { %v452_v49 = vmul.f32 %v450_v48, %v446_v47 }
 0xba5   :  { %455 = vrot.lane.b32.xlu1 %v452_v49, %s1842_s2 }
 0xc17   :  { %v456_v51 = vpop.permute.xlu1 %455 }
 0xc18   :  { %v458_v52 = vadd.f32 %v456_v51, %v453_v50 }
 0xc1a   :  { %1754 = vtanh.f32 %v458_v52 }
 0xc27   :  { %v1755_v53 = vpop.eup %1754 }
 0xc28   :  { %461 = vrot.lane.b32.xlu0 %v1755_v53, %s1838_s1 }
 0xc9a   :  { %v462_v54 = vpop.permute.xlu0 %461 }
 0xc9b   :  { %v464_v55 = vmul.f32 %v462_v54, %v446_v47 }
 0xc9d   :  { %v465_v56 = vpack.c.bf16 %v464_v55, %v464_v55 }
 0xc9f   :  { %467 = vrot.lane.b32.xlu1 %v465_v56, %s1842_s2 }
 0xd11   :  { %v2013_v57 = vpop.permute.xlu1 %467 }
 0xd12   :  { %1585 = vmatmul.mubr.msk.bf16.vlgmr.msra.gmra.mxu0 %vm184_vm3, %v2013_v57 }
 0xd13   :  { %1597 = vmatpush3.bf16.msra.mxu0 %v1912_v16  ;;  %1600 = vmatprep.mubr.msk.bf16.mxu0 %vm1840_vm2, %v1839_v15 }
 0xd14   :  { %1598 = vmatprep.subr.bf16.mxu0 %v1839_v15 }
 0xd17   :  { %1599 = vmatpush3.bf16.msra.mxu0 %v1921_v17 }
 0xd18   :  { %1612 = vmatprep.subr.bf16.mxu0 %v1839_v15 }
 0xdd2   :  { %v506_v59 = vpop.f32.mrf.mxu0 }
 0xdd3   :  { %v512_v60 = vadd.f32 %v506_v59, %v137_v58  ;;  %v2078_v58 = vld [vmem:[%s2292_s4 + $0x18] sm:$0xff]   ;;  %v2085_v59 = vld [vmem:[%s2292_s4 + $0x10] sm:$0xff]  }
 0xdd4   :  { %v1586_v61 = vpop.f32.mrf.mxu0 }
 0xdd5   :  { %1756 = vtanh.f32 %v512_v60  ;;  %v513_v16 = vmul.f32 0.5, %v512_v60 }
 0xdd6   :  { %v509_v62 = vpop.f32.mrf.mxu0 }
 0xdd7   :  { %1758 = vtanh.f32 %v513_v16 }
 0xdd8   :  { %v1587_v63 = vpop.f32.mrf.mxu0 }
 0xde2   :  { %v1757_v0 = vpop.eup %1756 }
 0xde3   :  { %519 = vrot.lane.b32.xlu0 %v1757_v0, %s1838_s1 }
 0xde4   :  { %v1759_v1 = vpop.eup %1758 }
 0xde5   :  { %v515_v2 = vmul.f32 0.5, %v1759_v1 }
 0xde7   :  { %v516_v3 = vadd.f32 0.5, %v515_v2 }
 0xde9   :  { %v523_v8 = vmul.f32 %v516_v3, %v458_v52 }
 0xe55   :  { %v520_v17 = vpop.permute.xlu0 %519 }
 0xe56   :  { %v522_v4 = vmul.f32 %v520_v17, %v516_v3 }
 0xe58   :  { %525 = vrot.lane.b32.xlu1 %v522_v4, %s1842_s2 }
 0xeca   :  { %v526_v10 = vpop.permute.xlu1 %525 }
 0xecb   :  { %v528_v11 = vadd.f32 %v526_v10, %v523_v8 }
 0xecd   :  { %1760 = vtanh.f32 %v528_v11 }
 0xeda   :  { %v1761_v12 = vpop.eup %1760 }
 0xedb   :  { %531 = vrot.lane.b32.xlu0 %v1761_v12, %s1838_s1 }
 0xf4d   :  { %v532_v13 = vpop.permute.xlu0 %531 }
 0xf4e   :  { %v534_v14 = vmul.f32 %v532_v13, %v516_v3 }
 0xf50   :  { %v535_v18 = vpack.c.bf16 %v534_v14, %v534_v14 }
 0xf52   :  { %537 = vrot.lane.b32.xlu1 %v535_v18, %s1842_s2 }
 0xfc4   :  { %v2034_v20 = vpop.permute.xlu1 %537 }
 0xfc5   :  { %1593 = vmatmul.mubr.msk.bf16.vlgmr.msra.gmra.mxu1 %vm184_vm3, %v2034_v20 }
 0xfc6   :  { %1605 = vmatpush3.bf16.msra.mxu1 %v2032_v19  ;;  %1608 = vmatprep.mubr.msk.bf16.mxu1 %vm1840_vm2, %v1839_v15 }
 0xfc7   :  { %1606 = vmatprep.subr.bf16.mxu1 %v1839_v15 }
 0xfca   :  { %1607 = vmatpush3.bf16.msra.mxu1 %v2042_v21 }
 0xfcb   :  { %1624 = vmatprep.subr.bf16.mxu1 %v1839_v15 }
 0xfcd   :  { %1609 = vmatmul.mubr.msk.bf16.vlgmr.msra.gmra.mxu1 %vm184_vm3, %v1933_v22 }
 0xfce   :  { %1632 = vmatprep.mubr.msk.bf16.mxu1 %vm1840_vm2, %v1839_v15  ;;  %1625 = vmatpush3.bf16.msra.mxu1 %v2078_v58 }
 0xfcf   :  { %1626 = vmatprep.subr.bf16.mxu1 %v1839_v15 }
 0xfd2   :  { %1627 = vmatpush3.bf16.msra.mxu1 %v2085_v59 }
 0xfd3   :  { %1628 = vmatprep.subr.bf16.mxu1 %v1839_v15 }
 0xfd6   :  { %1629 = vmatpush3.bf16.msra.mxu1 %v2032_v19 }
 0xfd7   :  { %1630 = vmatprep.subr.bf16.mxu1 %v1839_v15 }
 0xfda   :  { %1631 = vmatpush3.bf16.msra.mxu1 %v2042_v21 }
 0xfdb   :  { %1648 = vmatprep.subr.bf16.mxu1 %v1839_v15 }
0x1085   :  { %v576_v25 = vpop.f32.mrf.mxu1 }
0x1086   :  { %v582_v26 = vadd.f32 %v576_v25, %v142_v24 }
0x1087   :  { %v1594_v27 = vpop.f32.mrf.mxu1 }
0x1088   :  { %1762 = vtanh.f32 %v582_v26  ;;  %v583_v36 = vmul.f32 0.5, %v582_v26 }
0x1089   :  { %v579_v28 = vpop.f32.mrf.mxu1 }
0x108b   :  { %v1595_v29 = vpop.f32.mrf.mxu1 }
0x108d   :  { %v736_v30 = vpop.f32.mrf.mxu1 }
0x108e   :  { %v737_v22 = vadd.f32 %v2058_v23, %v736_v30 }
0x108f   :  { %v1610_v31 = vpop.f32.mrf.mxu1 }
0x1090   :  { %1764 = vtanh.f32 %v737_v22  ;;  %v742_v37 = vmul.f32 0.5, %v737_v22 }
0x1091   :  { %v739_v32 = vpop.f32.mrf.mxu1  ;;  %1766 = vtanh.f32 %v583_v36 }
0x1092   :  { %1768 = vtanh.f32 %v742_v37 }
0x1093   :  { %v1611_v33 = vpop.f32.mrf.mxu1 }
0x1095   :  { %v1763_v34 = vpop.eup %1762 }
0x1096   :  { %589 = vrot.lane.b32.xlu0 %v1763_v34, %s1838_s1 }
0x109d   :  { %v1765_v7 = vpop.eup %1764 }
0x109e   :  { %748 = vrot.lane.b32.xlu0 %v1765_v7, %s1838_s1  ;;  %v1767_v38 = vpop.eup %1766 }
0x109f   :  { %v585_v39 = vmul.f32 0.5, %v1767_v38  ;;  %v1769_v41 = vpop.eup %1768 }
0x10a0   :  { %v744_v44 = vmul.f32 0.5, %v1769_v41 }
0x10a1   :  { %v586_v40 = vadd.f32 0.5, %v585_v39 }
0x10a2   :  { %v745_v45 = vadd.f32 0.5, %v744_v44 }
0x10a3   :  { %v593_v50 = vmul.f32 %v586_v40, %v528_v11 }
0x1108   :  { %v590_v42 = vpop.permute.xlu0 %589 }
0x1109   :  { %v592_v43 = vmul.f32 %v590_v42, %v586_v40 }
0x110b   :  { %595 = vrot.lane.b32.xlu1 %v592_v43, %s1842_s2 }
0x1110   :  { %v749_v47 = vpop.permute.xlu0 %748 }
0x1111   :  { %v751_v48 = vmul.f32 %v749_v47, %v745_v45 }
0x1113   :  { %1770 = vtanh.f32 %v751_v48 }
0x1120   :  { %v1771_v49 = vpop.eup %1770 }
0x1121   :  { %754 = vrot.lane.b32.xlu0 %v1771_v49, %s1841_s16 }
0x117d   :  { %v596_v51 = vpop.permute.xlu1 %595 }
0x117e   :  { %v2065_v52 = vadd.f32 %v596_v51, %v593_v50 }
0x1180   :  { %1772 = vtanh.f32 %v2065_v52 }
0x118d   :  { %v1773_v53 = vpop.eup %1772 }
0x118e   :  { %601 = vrot.lane.b32.xlu1 %v1773_v53, %s1838_s1 }
0x1193   :  { %v755_v54 = vpop.permute.xlu0 %754 }
0x1194   :  { %v2069_v55 = vmul.f32 %v755_v54, %v745_v45 }
0x1196   :  { %v758_v56 = vpack.c.bf16 %v2069_v55, %v2069_v55 }
0x1198   :  { %760 = vrot.lane.b32.xlu0 %v758_v56, %s1838_s1 }
0x119c   :  { %830 = vrot.lane.b32.xlu0 %v751_v48, %s1842_s2 }
0x1200   :  { %v602_v60 = vpop.permute.xlu1 %601 }
0x1201   :  { %v604_v61 = vmul.f32 %v602_v60, %v586_v40 }
0x1203   :  { %v605_v62 = vpack.c.bf16 %v604_v61, %v604_v61 }
0x1205   :  { %607 = vrot.lane.b32.xlu1 %v605_v62, %s1842_s2 }
0x120a   :  { %v761_v0 = vpop.permute.xlu0 %760 }
0x120b   :  { %v763_v16 = vsel %vm184_vm3, %v1950_v46, %v761_v0  ;;  %v145_v46 = vadd.f32 %v1988_v9, %v1904_v5 }
0x120e   :  { %v831_v27 = vpop.permute.xlu0 %830 }
0x1277   :  { %v2094_v63 = vpop.permute.xlu1 %607 }
0x1278   :  { %1601 = vmatmul.mubr.msk.bf16.vlgmr.msra.gmra.mxu0 %vm184_vm3, %v2094_v63 }
0x1279   :  { %1613 = vmatpush3.bf16.msra.mxu0 %v2078_v58  ;;  %1620 = vmatprep.mubr.msk.bf16.mxu0 %vm1840_vm2, %v1839_v15 }
0x127a   :  { %1614 = vmatprep.subr.bf16.mxu0 %v1839_v15 }
0x127d   :  { %1615 = vmatpush3.bf16.msra.mxu0 %v2085_v59 }
0x127e   :  { %1616 = vmatprep.subr.bf16.mxu0 %v1839_v15 }
0x1281   :  { %1617 = vmatpush3.bf16.msra.mxu0 %v2032_v19 }
0x1282   :  { %1618 = vmatprep.subr.bf16.mxu0 %v1839_v15 }
0x1285   :  { %1619 = vmatpush3.bf16.msra.mxu0 %v2042_v21 }
0x1286   :  { %1636 = vmatprep.subr.bf16.mxu0 %v1839_v15 }
0x1288   :  { %1621 = vmatmul.mubr.msk.bf16.vlgmr.msra.gmra.mxu0 %vm776_vm4, %v763_v16 }
0x1289   :  { %1637 = vmatpush3.bf16.msra.mxu0 %v2078_v58  ;;  %1644 = vmatprep.mubr.msk.bf16.mxu0 %vm1840_vm2, %v1839_v15 }
0x128a   :  { %1638 = vmatprep.subr.bf16.mxu0 %v1839_v15 }
0x128d   :  { %1639 = vmatpush3.bf16.msra.mxu0 %v2085_v59 }
0x128e   :  { %1640 = vmatprep.subr.bf16.mxu0 %v1839_v15 }
0x1291   :  { %1641 = vmatpush3.bf16.msra.mxu0 %v2032_v19 }
0x1292   :  { %1642 = vmatprep.subr.bf16.mxu0 %v1839_v15 }
0x1295   :  { %1643 = vmatpush3.bf16.msra.mxu0 %v2042_v21 }
0x1296   :  { %1660 = vmatprep.subr.bf16.mxu0 %v1839_v15 }
0x1338   :  { %v646_v1 = vpop.f32.mrf.mxu0 }
0x1339   :  { %v2123_v2 = vadd.f32 %v646_v1, %v145_v46 }
0x133a   :  { %v1602_v3 = vpop.f32.mrf.mxu0 }
0x133c   :  { %v649_v17 = vpop.f32.mrf.mxu0 }
0x133e   :  { %v1603_v4 = vpop.f32.mrf.mxu0 }
0x1348   :  { %v813_v8 = vpop.f32.mrf.mxu0 }
0x1349   :  { %v814_v10 = vadd.f32 %v2058_v23, %v813_v8 }
0x134a   :  { %v1622_v11 = vpop.f32.mrf.mxu0 }
0x134b   :  { %1774 = vtanh.f32 %v814_v10  ;;  %v819_v18 = vmul.f32 0.5, %v814_v10 }
0x134c   :  { %v816_v12 = vpop.f32.mrf.mxu0 }
0x134d   :  { %1776 = vtanh.f32 %v819_v18 }
0x134e   :  { %v1623_v13 = vpop.f32.mrf.mxu0 }
0x1358   :  { %v1775_v14 = vpop.eup %1774 }
0x1359   :  { %825 = vrot.lane.b32.xlu1 %v1775_v14, %s1838_s1 }
0x135a   :  { %v1777_v24 = vpop.eup %1776 }
0x135b   :  { %v821_v5 = vmul.f32 0.5, %v1777_v24 }
0x135d   :  { %v822_v9 = vadd.f32 0.5, %v821_v5 }
0x135f   :  { %v833_v28 = vmul.f32 %v831_v27, %v822_v9 }
0x13cb   :  { %v826_v25 = vpop.permute.xlu1 %825 }
0x13cc   :  { %v828_v26 = vmul.f32 %v826_v25, %v822_v9 }
0x13ce   :  { %835 = vrot.lane.b32.xlu1 %v828_v26, %s1842_s2 }
0x1440   :  { %v836_v29 = vpop.permute.xlu1 %835 }
0x1441   :  { %v838_v30 = vadd.f32 %v836_v29, %v833_v28 }
0x1443   :  { %1778 = vtanh.f32 %v838_v30 }
0x1450   :  { %v1779_v22 = vpop.eup %1778 }
0x1451   :  { %841 = vrot.lane.b32.xlu0 %v1779_v22, %s1838_s1 }
0x14c3   :  { %v842_v31 = vpop.permute.xlu0 %841 }
0x14c4   :  { %v2129_v32 = vmul.f32 %v842_v31, %v822_v9 }
0x14c6   :  { %v845_v33 = vpack.c.bf16 %v2129_v32, %v2129_v32 }
0x14c8   :  { %847 = vrot.lane.b32.xlu1 %v845_v33, %s1838_s1 }
0x153a   :  { %v848_v34 = vpop.permute.xlu1 %847 }
0x153b   :  { %v850_v7 = vsel %vm184_vm3, %v1976_v6, %v848_v34 }
0x153c   :  { %1633 = vmatmul.mubr.msk.bf16.vlgmr.msra.gmra.mxu1 %vm776_vm4, %v850_v7 }
0x153d   :  { %1649 = vmatpush3.bf16.msra.mxu1 %v2078_v58  ;;  %1656 = vmatprep.mubr.msk.bf16.mxu1 %vm1840_vm2, %v1839_v15 }
0x153e   :  { %1650 = vmatprep.subr.bf16.mxu1 %v1839_v15 }
0x1541   :  { %1651 = vmatpush3.bf16.msra.mxu1 %v2085_v59 }
0x1542   :  { %1652 = vmatprep.subr.bf16.mxu1 %v1839_v15 }
0x1545   :  { %1653 = vmatpush3.bf16.msra.mxu1 %v2032_v19 }
0x1546   :  { %1654 = vmatprep.subr.bf16.mxu1 %v1839_v15 }
0x1549   :  { %1655 = vmatpush3.bf16.msra.mxu1 %v2042_v21 }
0x154a   :  { %1672 = vmatprep.subr.bf16.mxu1 %v1839_v15 }
0x15fc   :  { %v887_v6 = vpop.f32.mrf.mxu1 }
0x15fd   :  { %v888_v36 = vadd.f32 %v2058_v23, %v887_v6 }
0x15fe   :  { %v1634_v37 = vpop.f32.mrf.mxu1 }
0x15ff   :  { %1780 = vtanh.f32 %v888_v36  ;;  %v893_v41 = vmul.f32 0.5, %v888_v36 }
0x1600   :  { %v890_v38 = vpop.f32.mrf.mxu1 }
0x1601   :  { %1782 = vtanh.f32 %v893_v41 }
0x1602   :  { %v1635_v39 = vpop.f32.mrf.mxu1 }
0x160c   :  { %v1781_v40 = vpop.eup %1780 }
0x160d   :  { %899 = vrot.lane.b32.xlu0 %v1781_v40, %s1838_s1 }
0x160e   :  { %v1783_v42 = vpop.eup %1782 }
0x160f   :  { %v895_v43 = vmul.f32 0.5, %v1783_v42 }
0x1611   :  { %v896_v44 = vadd.f32 0.5, %v895_v43 }
0x1613   :  { %v903_v48 = vmul.f32 %v896_v44, %v838_v30 }
0x167f   :  { %v900_v45 = vpop.permute.xlu0 %899 }
0x1680   :  { %v902_v47 = vmul.f32 %v900_v45, %v896_v44 }
0x1682   :  { %905 = vrot.lane.b32.xlu1 %v902_v47, %s1842_s2 }
0x16f4   :  { %v906_v49 = vpop.permute.xlu1 %905 }
0x16f5   :  { %v908_v50 = vadd.f32 %v906_v49, %v903_v48 }
0x16f7   :  { %1784 = vtanh.f32 %v908_v50 }
0x1704   :  { %v1785_v51 = vpop.eup %1784 }
0x1705   :  { %911 = vrot.lane.b32.xlu0 %v1785_v51, %s1838_s1 }
0x1777   :  { %v912_v53 = vpop.permute.xlu0 %911 }
0x1778   :  { %v2151_v54 = vmul.f32 %v912_v53, %v896_v44 }
0x177a   :  { %v915_v56 = vpack.c.bf16 %v2151_v54, %v2151_v54 }
0x177c   :  { %917 = vrot.lane.b32.xlu1 %v915_v56, %s1838_s1 }
0x17ee   :  { %v918_v60 = vpop.permute.xlu1 %917 }
0x17ef   :  { %v920_v61 = vsel %vm184_vm3, %v1998_v35, %v918_v60 }
0x17f0   :  { %1645 = vmatmul.mubr.msk.bf16.vlgmr.msra.gmra.mxu0 %vm776_vm4, %v920_v61 }
0x17f1   :  { %1661 = vmatpush3.bf16.msra.mxu0 %v2078_v58  ;;  %1668 = vmatprep.mubr.msk.bf16.mxu0 %vm1840_vm2, %v1839_v15 }
0x17f2   :  { %1662 = vmatprep.subr.bf16.mxu0 %v1839_v15 }
0x17f5   :  { %1663 = vmatpush3.bf16.msra.mxu0 %v2085_v59 }
0x17f6   :  { %1664 = vmatprep.subr.bf16.mxu0 %v1839_v15 }
0x17f9   :  { %1665 = vmatpush3.bf16.msra.mxu0 %v2032_v19 }
0x17fa   :  { %1666 = vmatprep.subr.bf16.mxu0 %v1839_v15 }
0x17fd   :  { %1667 = vmatpush3.bf16.msra.mxu0 %v2042_v21 }
0x17fe   :  { %1684 = vmatprep.subr.bf16.mxu0 %v1839_v15 }
0x18b0   :  { %v957_v35 = vpop.f32.mrf.mxu0 }
0x18b1   :  { %v958_v62 = vadd.f32 %v2058_v23, %v957_v35 }
0x18b2   :  { %v1646_v0 = vpop.f32.mrf.mxu0 }
0x18b3   :  { %1786 = vtanh.f32 %v958_v62  ;;  %v963_v3 = vmul.f32 0.5, %v958_v62  ;;  %v653_v0 = vmul.f32 0.5, %v2123_v2 }
0x18b4   :  { %v960_v16 = vpop.f32.mrf.mxu0 }
0x18b5   :  { %1788 = vtanh.f32 %v963_v3 }
0x18b6   :  { %v1647_v46 = vpop.f32.mrf.mxu0 }
0x18c0   :  { %v1787_v1 = vpop.eup %1786 }
0x18c1   :  { %969 = vrot.lane.b32.xlu0 %v1787_v1, %s1838_s1 }
0x18c2   :  { %v1789_v17 = vpop.eup %1788 }
0x18c3   :  { %v965_v4 = vmul.f32 0.5, %v1789_v17 }
0x18c5   :  { %v966_v8 = vadd.f32 0.5, %v965_v4 }
0x18c7   :  { %v973_v12 = vmul.f32 %v966_v8, %v908_v50 }
0x1933   :  { %v970_v10 = vpop.permute.xlu0 %969 }
0x1934   :  { %v972_v11 = vmul.f32 %v970_v10, %v966_v8 }
0x1936   :  { %975 = vrot.lane.b32.xlu1 %v972_v11, %s1842_s2 }
0x19a8   :  { %v976_v13 = vpop.permute.xlu1 %975 }
0x19a9   :  { %v978_v14 = vadd.f32 %v976_v13, %v973_v12 }
0x19ab   :  { %1790 = vtanh.f32 %v978_v14 }
0x19b8   :  { %v1791_v18 = vpop.eup %1790 }
0x19b9   :  { %981 = vrot.lane.b32.xlu0 %v1791_v18, %s1838_s1 }
0x1a2b   :  { %v982_v24 = vpop.permute.xlu0 %981 }
0x1a2c   :  { %v2173_v5 = vmul.f32 %v982_v24, %v966_v8 }
0x1a2e   :  { %v985_v9 = vpack.c.bf16 %v2173_v5, %v2173_v5 }
0x1a30   :  { %987 = vrot.lane.b32.xlu1 %v985_v9, %s1838_s1 }
0x1aa2   :  { %v988_v25 = vpop.permute.xlu1 %987 }
0x1aa3   :  { %v990_v26 = vsel %vm184_vm3, %v2013_v57, %v988_v25 }
0x1aa4   :  { %1657 = vmatmul.mubr.msk.bf16.vlgmr.msra.gmra.mxu1 %vm776_vm4, %v990_v26 }
0x1aa5   :  { %1673 = vmatpush3.bf16.msra.mxu1 %v2078_v58  ;;  %1680 = vmatprep.mubr.msk.bf16.mxu1 %vm1840_vm2, %v1839_v15 }
0x1aa6   :  { %1674 = vmatprep.subr.bf16.mxu1 %v1839_v15 }
0x1aa9   :  { %1675 = vmatpush3.bf16.msra.mxu1 %v2085_v59 }
0x1aaa   :  { %1676 = vmatprep.subr.bf16.mxu1 %v1839_v15 }
0x1aad   :  { %1677 = vmatpush3.bf16.msra.mxu1 %v2032_v19 }
0x1aae   :  { %1678 = vmatprep.subr.bf16.mxu1 %v1839_v15 }
0x1ab1   :  { %1679 = vmatpush3.bf16.msra.mxu1 %v2042_v21 }
0x1b64   :  { %v1027_v57 = vpop.f32.mrf.mxu1 }
0x1b65   :  { %v1028_v27 = vadd.f32 %v2058_v23, %v1027_v57 }
0x1b66   :  { %v1658_v28 = vpop.f32.mrf.mxu1 }
0x1b67   :  { %1792 = vtanh.f32 %v1028_v27  ;;  %v1033_v31 = vmul.f32 0.5, %v1028_v27 }
0x1b68   :  { %v1030_v29 = vpop.f32.mrf.mxu1 }
0x1b69   :  { %1794 = vtanh.f32 %v1033_v31 }
0x1b6a   :  { %v1659_v30 = vpop.f32.mrf.mxu1 }
0x1b74   :  { %v1793_v22 = vpop.eup %1792 }
0x1b75   :  { %1039 = vrot.lane.b32.xlu0 %v1793_v22, %s1838_s1 }
0x1b76   :  { %v1795_v33 = vpop.eup %1794 }
0x1b77   :  { %v1035_v34 = vmul.f32 0.5, %v1795_v33 }
0x1b79   :  { %v1036_v7 = vadd.f32 0.5, %v1035_v34 }
0x1b7b   :  { %v1043_v37 = vmul.f32 %v1036_v7, %v978_v14 }
0x1be7   :  { %v1040_v6 = vpop.permute.xlu0 %1039 }
0x1be8   :  { %v1042_v36 = vmul.f32 %v1040_v6, %v1036_v7 }
0x1bea   :  { %1045 = vrot.lane.b32.xlu1 %v1042_v36, %s1842_s2 }
0x1c5c   :  { %v1046_v38 = vpop.permute.xlu1 %1045 }
0x1c5d   :  { %v1048_v39 = vadd.f32 %v1046_v38, %v1043_v37 }
0x1c5f   :  { %1796 = vtanh.f32 %v1048_v39 }
0x1c6c   :  { %v1797_v40 = vpop.eup %1796 }
0x1c6d   :  { %1051 = vrot.lane.b32.xlu0 %v1797_v40, %s1838_s1 }
0x1cdf   :  { %v1052_v41 = vpop.permute.xlu0 %1051 }
0x1ce0   :  { %v2194_v42 = vmul.f32 %v1052_v41, %v1036_v7 }
0x1ce2   :  { %v1055_v43 = vpack.c.bf16 %v2194_v42, %v2194_v42 }
0x1ce4   :  { %1057 = vrot.lane.b32.xlu1 %v1055_v43, %s1838_s1 }
0x1d56   :  { %v1058_v44 = vpop.permute.xlu1 %1057 }
0x1d57   :  { %v1060_v45 = vsel %vm184_vm3, %v2034_v20, %v1058_v44 }
0x1d58   :  { %1669 = vmatmul.mubr.msk.bf16.vlgmr.msra.gmra.mxu0 %vm776_vm4, %v1060_v45 }
0x1d59   :  { %1685 = vmatpush3.bf16.msra.mxu0 %v2078_v58  ;;  %1692 = vmatprep.mubr.msk.bf16.mxu0 %vm1840_vm2, %v1839_v15 }
0x1d5a   :  { %1686 = vmatprep.subr.bf16.mxu0 %v1839_v15 }
0x1d5d   :  { %1687 = vmatpush3.bf16.msra.mxu0 %v2085_v59 }
0x1d5e   :  { %1688 = vmatprep.subr.bf16.mxu0 %v1839_v15 }
0x1d61   :  { %1689 = vmatpush3.bf16.msra.mxu0 %v2032_v19 }
0x1d62   :  { %1690 = vmatprep.subr.bf16.mxu0 %v1839_v15 }
0x1d65   :  { %1691 = vmatpush3.bf16.msra.mxu0 %v2042_v21 }
0x1e18   :  { %v1097_v20 = vpop.f32.mrf.mxu0 }
0x1e19   :  { %v1098_v47 = vadd.f32 %v2058_v23, %v1097_v20 }
0x1e1a   :  { %v1670_v48 = vpop.f32.mrf.mxu0 }
0x1e1b   :  { %1798 = vtanh.f32 %v1098_v47  ;;  %v1103_v51 = vmul.f32 0.5, %v1098_v47 }
0x1e1c   :  { %v1100_v58 = vpop.f32.mrf.mxu0 }
0x1e1d   :  { %1800 = vtanh.f32 %v1103_v51 }
0x1e1e   :  { %v1671_v49 = vpop.f32.mrf.mxu0 }
0x1e28   :  { %v1799_v50 = vpop.eup %1798 }
0x1e29   :  { %1109 = vrot.lane.b32.xlu0 %v1799_v50, %s1838_s1 }
0x1e2a   :  { %v1801_v59 = vpop.eup %1800 }
0x1e2b   :  { %v1105_v53 = vmul.f32 0.5, %v1801_v59 }
0x1e2d   :  { %v1106_v56 = vadd.f32 0.5, %v1105_v53 }
0x1e2f   :  { %v1113_v15 = vmul.f32 %v1106_v56, %v1048_v39 }
0x1e9b   :  { %v1110_v19 = vpop.permute.xlu0 %1109 }
0x1e9c   :  { %v1112_v60 = vmul.f32 %v1110_v19, %v1106_v56 }
0x1e9e   :  { %1115 = vrot.lane.b32.xlu1 %v1112_v60, %s1842_s2  ;;  %v1270_v60 = vpack.c.bf16 %v2129_v32, %v2069_v55  ;;  %v1725_v55 = vld [vmem:[%s2294_s6] sm:$0xff]  }
0x1f10   :  { %v1116_v21 = vpop.permute.xlu1 %1115 }
0x1f11   :  { %v1118_v61 = vadd.f32 %v1116_v21, %v1113_v15  ;;  %v1724_v15 = vld [vmem:[%s2294_s6 + $0x8] sm:$0xff]  }
0x1f12   :  { %1696 = vmatprep.subr.bf16.mxu1 %v1724_v15 }
0x1f13   :  { %1802 = vtanh.f32 %v1118_v61 }
0x1f14   :  { %1804 = vtanh.f32 %v2123_v2 }
0x1f15   :  { %1806 = vtanh.f32 %v653_v0 }
0x1f20   :  { %v1803_v35 = vpop.eup %1802 }
0x1f21   :  { %1121 = vrot.lane.b32.xlu0 %v1803_v35, %s1838_s1  ;;  %v1805_v62 = vpop.eup %1804 }
0x1f22   :  { %v1807_v16 = vpop.eup %1806 }
0x1f23   :  { %v655_v46 = vmul.f32 0.5, %v1807_v16 }
0x1f25   :  { %659 = vrot.lane.b32.xlu0 %v1805_v62, %s1838_s1  ;;  %v656_v4 = vadd.f32 0.5, %v655_v46  ;;  %v1271_v62 = vpack.c.bf16 %v2173_v5, %v2151_v54  ;;  %v1461_v54 = vld [vmem:[%s2295_s7] ss:$0 sm:$0xff] }
0x1f27   :  { %v663_v12 = vmul.f32 %v656_v4, %v2065_v52 }
0x1f93   :  { %v1122_v1 = vpop.permute.xlu0 %1121 }
0x1f94   :  { %v2218_v3 = vmul.f32 %v1122_v1, %v1106_v56 }
0x1f96   :  { %v1125_v17 = vpack.c.bf16 %v2218_v3, %v2218_v3 }
0x1f97   :  { %v660_v8 = vpop.permute.xlu0 %659 }
0x1f98   :  { %v662_v10 = vmul.f32 %v660_v8, %v656_v4  ;;  %1127 = vrot.lane.b32.xlu1 %v1125_v17, %s1838_s1 }
0x1f9a   :  { %665 = vrot.lane.b32.xlu0 %v662_v10, %s1842_s2 }
0x200a   :  { %v1128_v11 = vpop.permute.xlu1 %1127 }
0x200b   :  { %v1130_v2 = vsel %vm184_vm3, %v2094_v63, %v1128_v11 }
0x200c   :  { %1681 = vmatmul.mubr.msk.bf16.vlgmr.msra.gmra.mxu1 %vm776_vm4, %v1130_v2  ;;  %v666_v13 = vpop.permute.xlu0 %665 }
0x200d   :  { %v668_v14 = vadd.f32 %v666_v13, %v663_v12  ;;  %1697 = vmatpush3.bf16.msra.mxu1 %v1724_v15 }
0x200e   :  { %1698 = vmatprep.subr.bf16.mxu1 %v1725_v55 }
0x200f   :  { %1808 = vtanh.f32 %v668_v14 }
0x2011   :  { %1699 = vmatpush3.bf16.msra.mxu1 %v1725_v55 }
0x201c   :  { %v1809_v18 = vpop.eup %1808 }
0x201d   :  { %671 = vrot.lane.b32.xlu0 %v1809_v18, %s1838_s1 }
0x208f   :  { %v672_v24 = vpop.permute.xlu0 %671 }
0x2090   :  { %v674_v9 = vmul.f32 %v672_v24, %v656_v4 }
0x2092   :  { %v1195_v25 = vpack.c.bf16 %v674_v9, %v674_v9 }
0x2094   :  { %1198 = vrot.lane.b32.xlu0 %v1195_v25, %s1842_s2 }
0x20cc   :  { %v1167_v26 = vpop.f32.mrf.mxu1 }
0x20cd   :  { %v1168_v57 = vadd.f32 %v2058_v23, %v1167_v26 }
0x20ce   :  { %v1682_v27 = vpop.f32.mrf.mxu1 }
0x20cf   :  { %1810 = vtanh.f32 %v1168_v57  ;;  %v1173_v29 = vmul.f32 0.5, %v1168_v57 }
0x20d0   :  { %v1170_v63 = vpop.f32.mrf.mxu1 }
0x20d1   :  { %1812 = vtanh.f32 %v1173_v29 }
0x20d2   :  { %v1683_v52 = vpop.f32.mrf.mxu1 }
0x20dc   :  { %v1811_v28 = vpop.eup %1810 }
0x20dd   :  { %1179 = vrot.lane.b32.xlu1 %v1811_v28, %s1838_s1 }
0x20de   :  { %v1813_v30 = vpop.eup %1812 }
0x20df   :  { %v1175_v22 = vmul.f32 0.5, %v1813_v30 }
0x20e1   :  { %v1176_v31 = vadd.f32 0.5, %v1175_v22 }
0x20e3   :  { %v1183_v7 = vmul.f32 %v1176_v31, %v1118_v61 }
0x2106   :  { %v1199_v41 = vpop.permute.xlu0 %1198 }
0x214f   :  { %v1180_v33 = vpop.permute.xlu1 %1179 }
0x2150   :  { %v1182_v34 = vmul.f32 %v1180_v33, %v1176_v31 }
0x2152   :  { %1185 = vrot.lane.b32.xlu1 %v1182_v34, %s1842_s2 }
0x21c4   :  { %v1186_v6 = vpop.permute.xlu1 %1185 }
0x21c5   :  { %v1188_v36 = vadd.f32 %v1186_v6, %v1183_v7 }
0x21c7   :  { %1814 = vtanh.f32 %v1188_v36 }
0x21d4   :  { %v1815_v37 = vpop.eup %1814 }
0x21d5   :  { %1191 = vrot.lane.b32.xlu1 %v1815_v37, %s1838_s1 }
0x2247   :  { %v1192_v38 = vpop.permute.xlu1 %1191 }
0x2248   :  { %v1194_v39 = vmul.f32 %v1192_v38, %v1176_v31 }
0x224a   :  { %v1196_v40 = vpack.c.bf16 %v1194_v39, %v1194_v39 }
0x224c   :  { %1201 = vrot.lane.b32.xlu1 %v1196_v40, %s1838_s1 }
0x22be   :  { %v1202_v43 = vpop.permute.xlu1 %1201 }
0x22bf   :  { %v1205_v44 = vsel %vm184_vm3, %v1199_v41, %v1202_v43 }
0x22c0   :  { %1693 = vmatmul.mubr.msk.bf16.vlgmr.msra.gmra.mxu0 %vm776_vm4, %v1205_v44 }
0x2380   :  { %v1242_v45 = vpop.f32.mrf.mxu0 }
0x2381   :  { %v1243_v20 = vadd.f32 %v2058_v23, %v1242_v45  ;;  %v1272_v23 = vpack.c.bf16 %v2218_v3, %v2194_v42 }
0x2382   :  { %v1694_v47 = vpop.f32.mrf.mxu0 }
0x2383   :  { %1816 = vtanh.f32 %v1243_v20  ;;  %v1248_v50 = vmul.f32 0.5, %v1243_v20 }
0x2384   :  { %v1245_v48 = vpop.f32.mrf.mxu0 }
0x2385   :  { %1818 = vtanh.f32 %v1248_v50 }
0x2386   :  { %v1695_v58 = vpop.f32.mrf.mxu0 }
0x2390   :  { %v1817_v49 = vpop.eup %1816 }
0x2391   :  { %1254 = vrot.lane.b32.xlu0 %v1817_v49, %s1838_s1 }
0x2392   :  { %v1819_v51 = vpop.eup %1818 }
0x2393   :  { %v1250_v59 = vmul.f32 0.5, %v1819_v51 }
0x2395   :  { %v1251_v53 = vadd.f32 0.5, %v1250_v59 }
0x2397   :  { %v1258_v21 = vmul.f32 %v1251_v53, %v1188_v36 }
0x2403   :  { %v1255_v56 = vpop.permute.xlu0 %1254 }
0x2404   :  { %v1257_v19 = vmul.f32 %v1255_v56, %v1251_v53 }
0x2406   :  { %1260 = vrot.lane.b32.xlu1 %v1257_v19, %s1842_s2 }
0x240a   :  { %1289 = vrot.lane.b32.xlu1 %v1270_v60, %s1842_s2 }
0x240e   :  { %1293 = vrot.lane.b32.xlu1 %v1272_v23, %s1842_s2 }
0x2478   :  { %v1261_v61 = vpop.permute.xlu1 %1260 }
0x2479   :  { %v1263_v35 = vadd.f32 %v1261_v61, %v1258_v21 }
0x247b   :  { %1820 = vtanh.f32 %v1263_v35 }
0x247c   :  { %v1290_v32 = vpop.permute.xlu1 %1289 }
0x247d   :  { %1700 = vmatprep.mubr.msk.bf16.mxu1 %vm184_vm3, %v1290_v32 }
0x2480   :  { %v1294_v3 = vpop.permute.xlu1 %1293 }
0x2488   :  { %v1821_v42 = vpop.eup %1820 }
0x2489   :  { %1266 = vrot.lane.b32.xlu0 %v1821_v42, %s1838_s1 }
0x248d   :  { %1291 = vrot.lane.b32.xlu0 %v1271_v62, %s1842_s2 }
0x24fb   :  { %v1267_v0 = vpop.permute.xlu0 %1266 }
0x24fc   :  { %v1269_v16 = vmul.f32 %v1267_v0, %v1251_v53 }
0x24fe   :  { %v1273_v46 = vpack.c.bf16 %v1269_v16, %v1194_v39 }
0x24ff   :  { %v1292_v1 = vpop.permute.xlu0 %1291 }
0x2500   :  { %1295 = vrot.lane.b32.xlu0 %v1273_v46, %s1842_s2  ;;  %1701 = vmatmul.mubr.msk.bf16.vlgmr.msra.gmra.mxu1 %vm184_vm3, %v1292_v1 }
0x2501   :  { %1704 = vmatprep.mubr.msk.bf16.mxu1 %vm184_vm3, %v1294_v3 }
0x2572   :  { %v1296_v17 = vpop.permute.xlu0 %1295 }
0x2573   :  { %1705 = vmatmul.mubr.msk.bf16.gmra.mxu1 %vm184_vm3, %v1296_v17 }
0x25c0   :  { %v1702_v5 = vpop.f32.mrf.mxu1 }
0x25c1   :  { %v1364_v4 = vadd.f32 %v1702_v5, %v1461_v54 }
0x25c2   :  { %v1355_v8 = vpop.f32.mrf.mxu1 }
0x25c3   :  { %v1388_v10 = vmul.f32 0.5, %v1364_v4  ;;  %v1356_v11 = vadd.f32 %v1461_v54, %v1355_v8 }
0x25c4   :  { %v1703_v2 = vpop.f32.mrf.mxu1 }
0x25c5   :  { %1822 = vtanh.f32 %v1388_v10  ;;  %v1386_v12 = vmul.f32 0.5, %v1356_v11  ;;  %v1367_v13 = vadd.f32 %v1703_v2, %v1461_v54 }
0x25c6   :  { %v1358_v14 = vpop.f32.mrf.mxu1 }
0x25c7   :  { %1824 = vtanh.f32 %v1386_v12  ;;  %v1389_v18 = vmul.f32 0.5, %v1367_v13  ;;  %v1359_v24 = vadd.f32 %v1461_v54, %v1358_v14 }
0x25c9   :  { %1826 = vtanh.f32 %v1389_v18  ;;  %v1387_v9 = vmul.f32 0.5, %v1359_v24 }
0x25cb   :  { %1828 = vtanh.f32 %v1387_v9 }
0x25d2   :  { %v1823_v25 = vpop.eup %1822 }
0x25d3   :  { %v1404_v26 = vmul.f32 0.5, %v1823_v25 }
0x25d4   :  { %v1825_v57 = vpop.eup %1824 }
0x25d5   :  { %v1412_v27 = vadd.f32 0.5, %v1404_v26  ;;  %v1402_v63 = vmul.f32 0.5, %v1825_v57 }
0x25d6   :  { %v1827_v52 = vpop.eup %1826 }
0x25d7   :  { %1420 = vst [vmem:[%s2296_s8 + $0x10] sm:$0xff] %v1412_v27  ;;  %v1410_v28 = vadd.f32 0.5, %v1402_v63  ;;  %v1405_v29 = vmul.f32 0.5, %v1827_v52 }
0x25d8   :  { %v1829_v30 = vpop.eup %1828 }
0x25d9   :  { %1418 = vst [vmem:[%s2296_s8] sm:$0xff] %v1410_v28  ;;  %v1413_v22 = vadd.f32 0.5, %v1405_v29  ;;  %v1403_v31 = vmul.f32 0.5, %v1829_v30 }
0x25db   :  { %1421 = vst [vmem:[%s2296_s8 + $0x18] sm:$0xff] %v1413_v22  ;;  %v1411_v33 = vadd.f32 0.5, %v1403_v31 }
0x25dd   :  { %1419 = vst [vmem:[%s2296_s8 + $0x8] sm:$0xff] %v1411_v33 }
0x2633   :  { %v1706_v34 = vpop.f32.mrf.mxu1 }
0x2634   :  { %v1380_v7 = vadd.f32 %v1706_v34, %v1461_v54 }
0x2635   :  { %v1371_v6 = vpop.f32.mrf.mxu1 }
0x2636   :  { %v1392_v36 = vmul.f32 0.5, %v1380_v7  ;;  %v1372_v37 = vadd.f32 %v1461_v54, %v1371_v6 }
0x2637   :  { %v1707_v38 = vpop.f32.mrf.mxu1 }
0x2638   :  { %1830 = vtanh.f32 %v1392_v36  ;;  %v1390_v39 = vmul.f32 0.5, %v1372_v37  ;;  %v1383_v40 = vadd.f32 %v1707_v38, %v1461_v54 }
0x2639   :  { %v1374_v41 = vpop.f32.mrf.mxu1 }
0x263a   :  { %1832 = vtanh.f32 %v1390_v39  ;;  %v1393_v43 = vmul.f32 0.5, %v1383_v40  ;;  %v1375_v44 = vadd.f32 %v1461_v54, %v1374_v41 }
0x263c   :  { %1834 = vtanh.f32 %v1393_v43  ;;  %v1391_v45 = vmul.f32 0.5, %v1375_v44 }
0x263e   :  { %1836 = vtanh.f32 %v1391_v45 }
0x2645   :  { %v1831_v20 = vpop.eup %1830 }
0x2646   :  { %v1408_v47 = vmul.f32 0.5, %v1831_v20 }
0x2647   :  { %v1833_v48 = vpop.eup %1832 }
0x2648   :  { %v1416_v58 = vadd.f32 0.5, %v1408_v47  ;;  %v1406_v49 = vmul.f32 0.5, %v1833_v48 }
0x2649   :  { %v1835_v50 = vpop.eup %1834 }
0x264a   :  { %1424 = vst [vmem:[%s2296_s8 + $0x30] sm:$0xff] %v1416_v58  ;;  %v1414_v51 = vadd.f32 0.5, %v1406_v49  ;;  %v1409_v59 = vmul.f32 0.5, %v1835_v50 }
0x264b   :  { %v1837_v53 = vpop.eup %1836 }
0x264c   :  { %1422 = vst [vmem:[%s2296_s8 + $0x20] sm:$0xff] %v1414_v51  ;;  %v1417_v56 = vadd.f32 0.5, %v1409_v59  ;;  %v1407_v19 = vmul.f32 0.5, %v1837_v53 }
0x264e   :  { %1425 = vst [vmem:[%s2296_s8 + $0x38] sm:$0xff] %v1417_v56  ;;  %v1415_v60 = vadd.f32 0.5, %v1407_v19 }
0x2650   :  { %1423 = vst [vmem:[%s2296_s8 + $0x28] sm:$0xff] %v1415_v60 }

</bundles_post_ra>
